<compile_context>
chip_gen: v7x
topology: tpu7x:2x2x1
jax: 0.10.0
libtpu: 0.0.40
codegen_flags: <defaults>
</compile_context>

<pallas_src>
import math
from functools import partial

import jax
import jax.numpy as jnp
from jax.experimental import pallas as pl
from jax.experimental.pallas import tpu as pltpu


# -----------------------------------------------------------------------------
# Per-generation VMEM budget & tiling helpers
# -----------------------------------------------------------------------------
def _default_vmem_limit():
    # v5e/v6e: 128 MiB physical VMEM -> generous scoped budget.
    # v7x / unknown: 64 MiB physical -> conservative 48 MiB.
    try:
        kind = jax.devices()[0].device_kind.lower()
    except Exception:
        kind = ""
    if "v5" in kind or "v6" in kind:
        return 100 * 1024 * 1024
    return 48 * 1024 * 1024


_VMEM_LIMIT = _default_vmem_limit()

_TILE_CANDIDATES = (1024, 512, 256, 128, 64, 32, 16, 8)


def _pick_tile_m(M):
    """Largest row tile (multiple of 8) dividing M that leaves >=2 grid steps."""
    for c in _TILE_CANDIDATES:
        if M % c == 0 and M // c >= 2:
            return c
    for c in _TILE_CANDIDATES:
        if M % c == 0:
            return c
    return M


def _pick_tile_lane(N, prefs=(2048, 1024, 512, 256, 128)):
    """Lane / reduction tile: multiple of 128 dividing N, else the full N."""
    for c in prefs:
        if N % c == 0:
            return c
    return N


def _pick_tile_seq(S):
    for c in (512, 256, 128, 64, 32, 16, 8):
        if S % c == 0 and S // c >= 2:
            return c
    return S


def _pad_rows(x2d, mult=8):
    """Pad the row (M) axis to a multiple of `mult`; return (padded, orig_M)."""
    M = x2d.shape[0]
    pad = (-M) % mult
    if pad:
        x2d = jnp.pad(x2d, ((0, pad), (0, 0)))
    return x2d, M


def _params(semantics):
    return pltpu.CompilerParams(
        dimension_semantics=semantics, vmem_limit_bytes=_VMEM_LIMIT)


# -----------------------------------------------------------------------------
# Kernel 1: fused multi-output linear (QKV proj / cross-KV proj).
#   y = x @ W + b  split into n_out chunks.  K-tiled with a VMEM accumulator.
# -----------------------------------------------------------------------------
def _fused_linear_kernel(x_ref, w_ref, b_ref, *rest, n_out):
    o_refs = rest[:n_out]
    acc_ref = rest[n_out]
    k = pl.program_id(1)

    @pl.when(k == 0)
    def _():
        acc_ref[...] = jnp.zeros_like(acc_ref)

    acc_ref[...] += jnp.dot(x_ref[...].astype(jnp.bfloat16), w_ref[...],
                            preferred_element_type=jnp.float32)

    @pl.when(k == pl.num_programs(1) - 1)
    def _():
        y = acc_ref[...] + b_ref[...]
        n = y.shape[-1] // n_out
        for i in range(n_out):
            o_refs[i][...] = y[:, i * n:(i + 1) * n].astype(o_refs[i].dtype)


def pallas_fused_linear(x2d, w, b, n_out, out_dtype=jnp.bfloat16):
    x2d, M0 = _pad_rows(x2d)
    M, K = x2d.shape
    N = w.shape[1]
    Ns = N // n_out
    tm = _pick_tile_m(M)
    tk = _pick_tile_lane(K)
    wb = w.astype(jnp.bfloat16)
    outs = pl.pallas_call(
        partial(_fused_linear_kernel, n_out=n_out),
        grid=(M // tm, K // tk),
        in_specs=[
            pl.BlockSpec((tm, tk), lambda i, k: (i, k)),
            pl.BlockSpec((tk, N), lambda i, k: (k, 0)),
            pl.BlockSpec((1, N), lambda i, k: (0, 0)),
        ],
        out_specs=tuple(
            pl.BlockSpec((tm, Ns), lambda i, k: (i, 0)) for _ in range(n_out)),
        out_shape=tuple(
            jax.ShapeDtypeStruct((M, Ns), out_dtype) for _ in range(n_out)),
        scratch_shapes=[pltpu.VMEM((tm, N), jnp.float32)],
        compiler_params=_params(("parallel", "arbitrary")),
    )(x2d, wb, b)
    outs = tuple(o[:M0] for o in outs)
    return outs if n_out > 1 else outs[0]


# -----------------------------------------------------------------------------
# Kernel 2: single-output linear with M / N / K tiling (Q proj, vocab logits).
# -----------------------------------------------------------------------------
def _linear_nk_kernel(x_ref, w_ref, b_ref, o_ref, acc_ref):
    k = pl.program_id(2)

    @pl.when(k == 0)
    def _():
        acc_ref[...] = jnp.zeros_like(acc_ref)

    acc_ref[...] += jnp.dot(x_ref[...].astype(jnp.bfloat16), w_ref[...],
                            preferred_element_type=jnp.float32)

    @pl.when(k == pl.num_programs(2) - 1)
    def _():
        o_ref[...] = (acc_ref[...] + b_ref[...]).astype(o_ref.dtype)


def pallas_linear(x2d, w, b, out_dtype=jnp.float32):
    x2d, M0 = _pad_rows(x2d)
    M, K = x2d.shape
    N = w.shape[1]
    tm = _pick_tile_m(M)
    tn = _pick_tile_lane(N)
    tk = _pick_tile_lane(K)
    wb = w.astype(jnp.bfloat16)
    out = pl.pallas_call(
        _linear_nk_kernel,
        grid=(M // tm, N // tn, K // tk),
        in_specs=[
            pl.BlockSpec((tm, tk), lambda i, j, k: (i, k)),
            pl.BlockSpec((tk, tn), lambda i, j, k: (k, j)),
            pl.BlockSpec((1, tn), lambda i, j, k: (0, j)),
        ],
        out_specs=pl.BlockSpec((tm, tn), lambda i, j, k: (i, j)),
        out_shape=jax.ShapeDtypeStruct((M, N), out_dtype),
        scratch_shapes=[pltpu.VMEM((tm, tn), jnp.float32)],
        compiler_params=_params(("parallel", "parallel", "arbitrary")),
    )(x2d, wb, b)
    return out[:M0]


# -----------------------------------------------------------------------------
# Kernel 3: attention core — all heads of one batch, query-tiled.
#   q/k/v head-interleaved (B, S, D) bf16; ctx written back (B, Sq, D) bf16.
#   bias is a bf16 additive mask (0 / -1e9).  Per-head context accumulates in
#   a (tq, D) VMEM scratch so vreg pressure stays bounded; one lane-dense
#   ctx store at the end.  Attention-probability output is optional.
# -----------------------------------------------------------------------------
def _mha_kernel(q_ref, k_ref, v_ref, bias_ref, *rest, n_head, return_weights):
    if return_weights:
        ctx_ref, w_ref, ctx_sc = rest
    else:
        (ctx_ref, ctx_sc), w_ref = rest, None

    q = q_ref[0]                                   # (tq, D)  bf16
    k = k_ref[0]                                   # (Sk, D)  bf16
    v = v_ref[0]                                   # (Sk, D)  bf16
    bias = bias_ref[0].astype(jnp.float32)         # (tq, Sk)
    D = q.shape[-1]
    dh = D // n_head
    scale = 1.0 / math.sqrt(dh)

    # TODO(synk): batch 2-4 heads per MXU push when dh < MXU contraction depth.
    for h in range(n_head):                        # static, unrolled
        qh = q[:, h * dh:(h + 1) * dh]
        kh = k[:, h * dh:(h + 1) * dh]
        vh = v[:, h * dh:(h + 1) * dh]
        s = jax.lax.dot_general(qh, kh, (((1,), (1,)), ((), ())),
                                preferred_element_type=jnp.float32)
        s = s * scale + bias
        m = jnp.max(s, axis=-1, keepdims=True)
        e = jnp.exp(s - m)
        denom = jnp.sum(e, axis=-1, keepdims=True)
        # exact reciprocal when the weights are returned (rows sum to 1);
        # fast EUP approximation otherwise.
        p = e * pl.reciprocal(denom, approx=not return_weights)
        if return_weights:
            w_ref[0, h] = p.astype(w_ref.dtype)
        ctx_sc[:, h * dh:(h + 1) * dh] = jnp.dot(
            p.astype(jnp.bfloat16), vh, preferred_element_type=jnp.float32)

    ctx_ref[0] = ctx_sc[...].astype(ctx_ref.dtype)


def pallas_mha_core(q, k, v, bias, n_head, return_weights=True):
    B, Sq, D = q.shape
    Sk = k.shape[1]
    tq = _pick_tile_seq(Sq)

    out_specs = [pl.BlockSpec((1, tq, D), lambda b, qi: (b, qi, 0))]
    out_shape = [jax.ShapeDtypeStruct((B, Sq, D), jnp.bfloat16)]
    if return_weights:
        # NOTE: the dense (B, n_head, Sq, Sk) writeback is bandwidth/VMEM heavy
        # for long sequences; pass return_weights=False if the maps are unused.
        out_specs.append(
            pl.BlockSpec((1, n_head, tq, Sk), lambda b, qi: (b, 0, qi, 0)))
        out_shape.append(
            jax.ShapeDtypeStruct((B, n_head, Sq, Sk), jnp.float32))

    outs = pl.pallas_call(
        partial(_mha_kernel, n_head=n_head, return_weights=return_weights),
        grid=(B, Sq // tq),
        in_specs=[
            pl.BlockSpec((1, tq, D), lambda b, qi: (b, qi, 0)),
            pl.BlockSpec((1, Sk, D), lambda b, qi: (b, 0, 0)),
            pl.BlockSpec((1, Sk, D), lambda b, qi: (b, 0, 0)),
            pl.BlockSpec((1, tq, Sk), lambda b, qi: (b, qi, 0)),
        ],
        out_specs=tuple(out_specs),
        out_shape=tuple(out_shape),
        scratch_shapes=[pltpu.VMEM((tq, D), jnp.float32)],
        compiler_params=_params(("parallel", "parallel")),
    )(q, k, v, bias)
    ctx = outs[0]
    weights = outs[1] if return_weights else None
    return ctx, weights


# -----------------------------------------------------------------------------
# Kernel 4: O-projection with fused residual-add + LayerNorm epilogue, K-tiled.
#   out = LN(residual + ctx @ Wo + bo)
# -----------------------------------------------------------------------------
def _proj_add_ln_kernel(x_ref, w_ref, b_ref, r_ref, g_ref, bt_ref, o_ref, acc_ref):
    k = pl.program_id(1)

    @pl.when(k == 0)
    def _():
        acc_ref[...] = jnp.zeros_like(acc_ref)

    acc_ref[...] += jnp.dot(x_ref[...].astype(jnp.bfloat16), w_ref[...],
                            preferred_element_type=jnp.float32)

    @pl.when(k == pl.num_programs(1) - 1)
    def _():
        y = acc_ref[...] + b_ref[...] + r_ref[...]
        mean = jnp.mean(y, axis=-1, keepdims=True)
        var = jnp.mean(jnp.square(y - mean), axis=-1, keepdims=True)
        o_ref[...] = ((y - mean) * jax.lax.rsqrt(var + 1e-5) * g_ref[...]
                      + bt_ref[...]).astype(o_ref.dtype)


def pallas_proj_add_ln(x2d, w, b, r2d, g, bt):
    x2d, M0 = _pad_rows(x2d)
    r2d, _ = _pad_rows(r2d)
    M, K = x2d.shape
    N = w.shape[1]
    tm = _pick_tile_m(M)
    tk = _pick_tile_lane(K)
    wb = w.astype(jnp.bfloat16)
    out = pl.pallas_call(
        _proj_add_ln_kernel,
        grid=(M // tm, K // tk),
        in_specs=[
            pl.BlockSpec((tm, tk), lambda i, k: (i, k)),
            pl.BlockSpec((tk, N), lambda i, k: (k, 0)),
            pl.BlockSpec((1, N), lambda i, k: (0, 0)),
            pl.BlockSpec((tm, N), lambda i, k: (i, 0)),
            pl.BlockSpec((1, N), lambda i, k: (0, 0)),
            pl.BlockSpec((1, N), lambda i, k: (0, 0)),
        ],
        out_specs=pl.BlockSpec((tm, N), lambda i, k: (i, 0)),
        out_shape=jax.ShapeDtypeStruct((M, N), jnp.float32),
        scratch_shapes=[pltpu.VMEM((tm, N), jnp.float32)],
        compiler_params=_params(("parallel", "arbitrary")),
    )(x2d, wb, b, r2d, g, bt)
    return out[:M0]


# -----------------------------------------------------------------------------
# Kernel 5: FFN with fused residual-add + LayerNorm epilogue, d_ff-tiled.
#   out = LN(x + relu(x @ W1 + b1) @ W2 + b2)
#   The d_ff intermediate only ever exists as a (tm, tf) chunk; each chunk's
#   contribution accumulates into a (tm, D) VMEM scratch.
# -----------------------------------------------------------------------------
def _ffn_add_ln_kernel(x_ref, w1_ref, b1_ref, w2_ref, b2_ref, g_ref, bt_ref,
                       o_ref, acc_ref):
    f = pl.program_id(1)

    @pl.when(f == 0)
    def _():
        acc_ref[...] = jnp.zeros_like(acc_ref)

    xb = x_ref[...].astype(jnp.bfloat16)
    h = jnp.dot(xb, w1_ref[...], preferred_element_type=jnp.float32) + b1_ref[...]
    h = jnp.maximum(h, 0.0)
    acc_ref[...] += jnp.dot(h.astype(jnp.bfloat16), w2_ref[...],
                            preferred_element_type=jnp.float32)

    @pl.when(f == pl.num_programs(1) - 1)
    def _():
        y = acc_ref[...] + b2_ref[...] + x_ref[...]
        mean = jnp.mean(y, axis=-1, keepdims=True)
        var = jnp.mean(jnp.square(y - mean), axis=-1, keepdims=True)
        o_ref[...] = ((y - mean) * jax.lax.rsqrt(var + 1e-5) * g_ref[...]
                      + bt_ref[...]).astype(o_ref.dtype)


def pallas_ffn_add_ln(x2d, w1, b1, w2, b2, g, bt):
    x2d, M0 = _pad_rows(x2d)
    M, D = x2d.shape
    F = w1.shape[1]
    tm = _pick_tile_m(M)
    tf = _pick_tile_lane(F, prefs=(1024, 512, 256, 128))
    w1b = w1.astype(jnp.bfloat16)
    w2b = w2.astype(jnp.bfloat16)
    out = pl.pallas_call(
        _ffn_add_ln_kernel,
        grid=(M // tm, F // tf),
        in_specs=[
            pl.BlockSpec((tm, D), lambda i, f: (i, 0)),
            pl.BlockSpec((D, tf), lambda i, f: (0, f)),
            pl.BlockSpec((1, tf), lambda i, f: (0, f)),
            pl.BlockSpec((tf, D), lambda i, f: (f, 0)),
            pl.BlockSpec((1, D), lambda i, f: (0, 0)),
            pl.BlockSpec((1, D), lambda i, f: (0, 0)),
            pl.BlockSpec((1, D), lambda i, f: (0, 0)),
        ],
        out_specs=pl.BlockSpec((tm, D), lambda i, f: (i, 0)),
        out_shape=jax.ShapeDtypeStruct((M, D), jnp.float32),
        scratch_shapes=[pltpu.VMEM((tm, D), jnp.float32)],
        compiler_params=_params(("parallel", "arbitrary")),
    )(x2d, w1b, b1, w2b, b2, g, bt)
    return out[:M0]


# -----------------------------------------------------------------------------
# Model glue (plain JAX: embedding gather, positional encoding, mask handling)
# -----------------------------------------------------------------------------
def sinusoidal_pe(max_len, d_model):
    pos = jnp.arange(max_len, dtype=jnp.float32)[:, None]
    i = jnp.arange(0, d_model, 2, dtype=jnp.float32)
    div = jnp.exp(-jnp.log(10000.0) * i / d_model)
    pe = jnp.zeros((max_len, d_model), jnp.float32)
    pe = pe.at[:, 0::2].set(jnp.sin(pos * div))
    pe = pe.at[:, 1::2].set(jnp.cos(pos * div))
    return pe


def mask_to_bias(mask, B, Sq, Sk):
    # TODO(synk): generate causal/padding bias in-kernel via broadcasted_iota +
    #             SMEM lengths instead of a dense (B,Sq,Sk) HBM read.
    if mask is None:
        return jnp.zeros((B, Sq, Sk), jnp.bfloat16)
    m = mask.reshape(B, -1, Sk)                 # (B,Sq,Sk) or (B,1,Sk)
    m = jnp.broadcast_to(m, (B, Sq, Sk))
    return jnp.where(m, 0.0, -1e9).astype(jnp.bfloat16)


def decoder_forward(params, trg, enc_output, trg_mask, dec_enc_mask, n_head,
                    return_weights=True):
    B, St = trg.shape
    Ss = enc_output.shape[1]
    D = params["embed"].shape[1]
    # token embedding (scaled) + positional encoding; dropout is identity (eval)
    x = params["embed"][trg] * jnp.float32(math.sqrt(D))
    x = x + params["pe"][:St][None, :, :]
    trg_bias = mask_to_bias(trg_mask, B, St, St)
    ce_bias = mask_to_bias(dec_enc_mask, B, St, Ss)
    enc2d = enc_output.reshape(-1, D)

    self_ws, cross_ws = [], []
    for lp in params["layers"]:
        x2d = x.reshape(-1, D)
        # 1) masked self-attention (fused QKV) + O-proj + add + LN
        q, k, v = pallas_fused_linear(x2d, lp["w_qkv"], lp["b_qkv"], 3)
        ctx, sw = pallas_mha_core(q.reshape(B, St, D), k.reshape(B, St, D),
                                  v.reshape(B, St, D), trg_bias, n_head,
                                  return_weights)
        x2d = pallas_proj_add_ln(ctx.reshape(-1, D), lp["wo_s"], lp["bo_s"],
                                 x2d, lp["ln1_g"], lp["ln1_b"])
        # 2) cross-attention (fused KV) + O-proj + add + LN
        qc = pallas_linear(x2d, lp["wq_c"], lp["bq_c"], out_dtype=jnp.bfloat16)
        kc, vc = pallas_fused_linear(enc2d, lp["w_kv_c"], lp["b_kv_c"], 2)
        ctxc, cw = pallas_mha_core(qc.reshape(B, St, D), kc.reshape(B, Ss, D),
                                   vc.reshape(B, Ss, D), ce_bias, n_head,
                                   return_weights)
        x2d = pallas_proj_add_ln(ctxc.reshape(-1, D), lp["wo_c"], lp["bo_c"],
                                 x2d, lp["ln2_g"], lp["ln2_b"])
        # 3) feed-forward + add + LN (single fused kernel, d_ff tiled)
        x2d = pallas_ffn_add_ln(x2d, lp["ff_w1"], lp["ff_b1"],
                                lp["ff_w2"], lp["ff_b2"],
                                lp["ln3_g"], lp["ln3_b"])
        x = x2d.reshape(B, St, D)
        self_ws.append(sw)
        cross_ws.append(cw)

    logits = pallas_linear(x.reshape(-1, D), params["fc_w"], params["fc_b"],
                           out_dtype=jnp.float32)
    return logits.reshape(B, St, -1), self_ws, cross_ws


# -----------------------------------------------------------------------------
# Deterministic parameter init (weights pre-packed for fused QKV / KV matmuls)
# -----------------------------------------------------------------------------
def init_params(key, vocab_size, d_model, n_head, d_ff, n_layer, max_len):
    keys = iter(jax.random.split(key, 8 * n_layer + 4))

    def nrm(shape, scale=0.05):
        return (scale * jax.random.normal(next(keys), shape)).astype(jnp.float32)

    layers = []
    for _ in range(n_layer):
        layers.append({
            "w_qkv": nrm((d_model, 3 * d_model)),
            "b_qkv": jnp.zeros((1, 3 * d_model), jnp.float32),
            "wo_s": nrm((d_model, d_model)), "bo_s": jnp.zeros((1, d_model), jnp.float32),
            "ln1_g": jnp.ones((1, d_model), jnp.float32), "ln1_b": jnp.zeros((1, d_model), jnp.float32),
            "wq_c": nrm((d_model, d_model)), "bq_c": jnp.zeros((1, d_model), jnp.float32),
            "w_kv_c": nrm((d_model, 2 * d_model)),
            "b_kv_c": jnp.zeros((1, 2 * d_model), jnp.float32),
            "wo_c": nrm((d_model, d_model)), "bo_c": jnp.zeros((1, d_model), jnp.float32),
            "ln2_g": jnp.ones((1, d_model), jnp.float32), "ln2_b": jnp.zeros((1, d_model), jnp.float32),
            "ff_w1": nrm((d_model, d_ff)), "ff_b1": jnp.zeros((1, d_ff), jnp.float32),
            "ff_w2": nrm((d_ff, d_model)), "ff_b2": jnp.zeros((1, d_model), jnp.float32),
            "ln3_g": jnp.ones((1, d_model), jnp.float32), "ln3_b": jnp.zeros((1, d_model), jnp.float32),
        })
    return {
        "embed": nrm((vocab_size, d_model), 1.0),
        "pe": sinusoidal_pe(max_len, d_model),
        "layers": layers,
        "fc_w": nrm((d_model, vocab_size)),
        "fc_b": jnp.zeros((1, vocab_size), jnp.float32),
    }


# -----------------------------------------------------------------------------
# Pure-JAX f32 reference (same math, full precision) for a sanity check
# -----------------------------------------------------------------------------
def _ref_mha(xq, xkv, wq, bq, wk, bk, wv, bv, wo, bo, bias, n_head):
    B, Sq, D = xq.shape
    Sk = xkv.shape[1]
    dh = D // n_head
    q = (xq @ wq + bq).reshape(B, Sq, n_head, dh).transpose(0, 2, 1, 3)
    k = (xkv @ wk + bk).reshape(B, Sk, n_head, dh).transpose(0, 2, 1, 3)
    v = (xkv @ wv + bv).reshape(B, Sk, n_head, dh).transpose(0, 2, 1, 3)
    s = jnp.einsum("bhqd,bhkd->bhqk", q, k) / math.sqrt(dh) + bias[:, None]
    p = jax.nn.softmax(s, axis=-1)
    ctx = jnp.einsum("bhqk,bhkd->bhqd", p, v).transpose(0, 2, 1, 3).reshape(B, Sq, D)
    return ctx @ wo + bo, p


def _ref_ln(y, g, b):
    mean = jnp.mean(y, axis=-1, keepdims=True)
    var = jnp.mean((y - mean) ** 2, axis=-1, keepdims=True)
    return (y - mean) / jnp.sqrt(var + 1e-5) * g + b


def ref_forward(params, trg, enc_output, trg_mask, dec_enc_mask, n_head):
    B, St = trg.shape
    D = params["embed"].shape[1]
    Ss = enc_output.shape[1]
    x = params["embed"][trg] * math.sqrt(D) + params["pe"][:St][None]
    trg_bias = mask_to_bias(trg_mask, B, St, St).astype(jnp.float32)
    ce_bias = mask_to_bias(dec_enc_mask, B, St, Ss).astype(jnp.float32)
    for lp in params["layers"]:
        wq, wk, wv = lp["w_qkv"][:, :D], lp["w_qkv"][:, D:2 * D], lp["w_qkv"][:, 2 * D:]
        bq, bk, bv = lp["b_qkv"][:, :D], lp["b_qkv"][:, D:2 * D], lp["b_qkv"][:, 2 * D:]
        sa, _ = _ref_mha(x, x, wq, bq, wk, bk, wv, bv,
                         lp["wo_s"], lp["bo_s"], trg_bias, n_head)
        x = _ref_ln(x + sa, lp["ln1_g"], lp["ln1_b"])
        wkc, wvc = lp["w_kv_c"][:, :D], lp["w_kv_c"][:, D:]
        bkc, bvc = lp["b_kv_c"][:, :D], lp["b_kv_c"][:, D:]
        ca, _ = _ref_mha(x, enc_output, lp["wq_c"], lp["bq_c"], wkc, bkc, wvc, bvc,
                         lp["wo_c"], lp["bo_c"], ce_bias, n_head)
        x = _ref_ln(x + ca, lp["ln2_g"], lp["ln2_b"])
        ff = jnp.maximum(x @ lp["ff_w1"] + lp["ff_b1"], 0.0) @ lp["ff_w2"] + lp["ff_b2"]
        x = _ref_ln(x + ff, lp["ln3_g"], lp["ln3_b"])
    return x @ params["fc_w"] + params["fc_b"]


# -----------------------------------------------------------------------------
if __name__ == "__main__":
    vocab_size, d_model, n_head, d_ff, n_layer, max_len = 50, 32, 4, 64, 2, 16
    B, S_trg, S_src = 2, 8, 8

    key = jax.random.PRNGKey(0)
    k_p, k_t, k_e = jax.random.split(key, 3)

    params = init_params(k_p, vocab_size, d_model, n_head, d_ff, n_layer, max_len)
    trg = jax.random.randint(k_t, (B, S_trg), 0, vocab_size, dtype=jnp.int32)
    enc_output = jax.random.normal(k_e, (B, S_src, d_model), dtype=jnp.float32)

    # causal (look-ahead) mask for the target, True = keep
    trg_mask = jnp.broadcast_to(
        jnp.tril(jnp.ones((S_trg, S_trg), dtype=bool)), (B, S_trg, S_trg))
    # source padding mask, shape (B,1,1,S_src); mask out last 2 src positions of batch 1
    dec_enc_mask = jnp.ones((B, 1, 1, S_src), dtype=bool)
    dec_enc_mask = dec_enc_mask.at[1, 0, 0, -2:].set(False)

    fwd = jax.jit(partial(decoder_forward, n_head=n_head, return_weights=True))
    logits, self_ws, cross_ws = fwd(params, trg, enc_output, trg_mask, dec_enc_mask)
    jax.block_until_ready(logits)

    # sanity check against a pure-JAX f32 reference of the same math
    ref_logits = ref_forward(params, trg, enc_output, trg_mask, dec_enc_mask, n_head)
    assert logits.shape == (B, S_trg, vocab_size)
    assert self_ws[0].shape == (B, n_head, S_trg, S_trg)
    assert cross_ws[0].shape == (B, n_head, S_trg, S_src)
    # bf16 MXU operands + f32 accumulation -> loose but meaningful tolerance
    assert jnp.allclose(logits, ref_logits, atol=5e-2, rtol=5e-2), (
        float(jnp.max(jnp.abs(logits - ref_logits))))
    # exact reciprocal when weights are requested -> rows sum to 1
    assert jnp.allclose(jnp.sum(self_ws[0], axis=-1), 1.0, atol=1e-3)
    assert jnp.allclose(jnp.sum(cross_ws[0], axis=-1), 1.0, atol=1e-3)

    print("KERNEL_OK")
</pallas_src>

<mosaic_0001>
module attributes {stable_mosaic.version = 11 : i64} {
  func.func @_fused_linear_kernel(%arg0: i32, %arg1: i32, %arg2: memref<8x32xf32, #tpu.memory_space<vmem>>, %arg3: memref<32x96xbf16, #tpu.memory_space<vmem>>, %arg4: memref<1x96xf32, #tpu.memory_space<vmem>>, %arg5: memref<8x32xbf16, #tpu.memory_space<vmem>>, %arg6: memref<8x32xbf16, #tpu.memory_space<vmem>>, %arg7: memref<8x32xbf16, #tpu.memory_space<vmem>>, %arg8: memref<8x96xf32, #tpu.memory_space<vmem>>) attributes {dimension_semantics = [#tpu.dimension_semantics<parallel>, #tpu.dimension_semantics<arbitrary>], iteration_bounds = array<i64: 2, 1>, scalar_prefetch = 0 : i64, scratch_operands = 1 : i64, tpu.core_type = #tpu.core_type<tc>, window_params = [{transform_indices = @transform_0, window_bounds = array<i64: 8, 32>}, {transform_indices = @transform_1, window_bounds = array<i64: 32, 96>}, {pipeline_mode = #tpu.pipeline_mode<synchronous>, transform_indices = @transform_2, window_bounds = array<i64: 1, 96>}, {transform_indices = @transform_3, window_bounds = array<i64: 8, 32>}, {transform_indices = @transform_4, window_bounds = array<i64: 8, 32>}, {transform_indices = @transform_5, window_bounds = array<i64: 8, 32>}]} {
    %c0_i32 = arith.constant 0 : i32
    %0 = arith.cmpi eq, %arg1, %c0_i32 : i32
    %1 = arith.extui %0 : i1 to i32
    %c0_i32_0 = arith.constant 0 : i32
    %2 = arith.cmpi ne, %1, %c0_i32_0 : i32
    scf.if %2 {
      %cst_10 = arith.constant 0.000000e+00 : f32
      %13 = vector.broadcast %cst_10 : f32 to vector<8x96xf32>
      %c0_11 = arith.constant 0 : index
      %c0_12 = arith.constant 0 : index
      %14 = vector.load %arg8[%c0_11, %c0_12] : memref<8x96xf32, #tpu.memory_space<vmem>>, vector<8x96xf32>
      tpu.vector_store %arg8[%c0_11, %c0_12], %13 {strides = array<i32>} : memref<8x96xf32, #tpu.memory_space<vmem>>, vector<8x96xf32>,
    } else {
    }
    %c0 = arith.constant 0 : index
    %c0_1 = arith.constant 0 : index
    %3 = vector.load %arg8[%c0, %c0_1] : memref<8x96xf32, #tpu.memory_space<vmem>>, vector<8x96xf32>
    %c0_2 = arith.constant 0 : index
    %c0_3 = arith.constant 0 : index
    %4 = vector.load %arg2[%c0_2, %c0_3] : memref<8x32xf32, #tpu.memory_space<vmem>>, vector<8x32xf32>
    %5 = arith.truncf %4 : vector<8x32xf32> to vector<8x32xbf16>
    %c0_4 = arith.constant 0 : index
    %c0_5 = arith.constant 0 : index
    %6 = vector.load %arg3[%c0_4, %c0_5] : memref<32x96xbf16, #tpu.memory_space<vmem>>, vector<32x96xbf16>
    %cst = arith.constant dense<0.000000e+00> : vector<8x96xf32>
    %7 = tpu.matmul %5, %6, %cst {dimension_numbers = #tpu.dot_dimension_numbers<[1], [0], [0], [1], [0, 0, 1, 1], [], []>} : vector<8x32xbf16>, vector<32x96xbf16>, vector<8x96xf32> -> vector<8x96xf32>
    %8 = arith.addf %3, %7 : vector<8x96xf32>
    %c0_6 = arith.constant 0 : index
    %c0_7 = arith.constant 0 : index
    %9 = vector.load %arg8[%c0_6, %c0_7] : memref<8x96xf32, #tpu.memory_space<vmem>>, vector<8x96xf32>
    tpu.vector_store %arg8[%c0_6, %c0_7], %8 {strides = array<i32>} : memref<8x96xf32, #tpu.memory_space<vmem>>, vector<8x96xf32>,
    %c0_i32_8 = arith.constant 0 : i32
    %10 = arith.cmpi eq, %arg1, %c0_i32_8 : i32
    %11 = arith.extui %10 : i1 to i32
    %c0_i32_9 = arith.constant 0 : i32
    %12 = arith.cmpi ne, %11, %c0_i32_9 : i32
    scf.if %12 {
      %c0_10 = arith.constant 0 : index
      %c0_11 = arith.constant 0 : index
      %13 = vector.load %arg8[%c0_10, %c0_11] : memref<8x96xf32, #tpu.memory_space<vmem>>, vector<8x96xf32>
      %c0_12 = arith.constant 0 : index
      %c0_13 = arith.constant 0 : index
      %14 = vector.load %arg4[%c0_12, %c0_13] : memref<1x96xf32, #tpu.memory_space<vmem>>, vector<1x96xf32>
      %15 = vector.broadcast %14 : vector<1x96xf32> to vector<8x96xf32>
      %16 = arith.addf %13, %15 : vector<8x96xf32>
      %17 = vector.extract_strided_slice %16 {offsets = [0, 0], sizes = [8, 32], strides = [1, 1]} : vector<8x96xf32> to vector<8x32xf32>
      %18 = arith.truncf %17 : vector<8x32xf32> to vector<8x32xbf16>
      %c0_14 = arith.constant 0 : index
      %c0_15 = arith.constant 0 : index
      %19 = vector.load %arg5[%c0_14, %c0_15] : memref<8x32xbf16, #tpu.memory_space<vmem>>, vector<8x32xbf16>
      tpu.vector_store %arg5[%c0_14, %c0_15], %18 {strides = array<i32>} : memref<8x32xbf16, #tpu.memory_space<vmem>>, vector<8x32xbf16>,
      %20 = vector.extract_strided_slice %16 {offsets = [0, 32], sizes = [8, 32], strides = [1, 1]} : vector<8x96xf32> to vector<8x32xf32>
      %21 = arith.truncf %20 : vector<8x32xf32> to vector<8x32xbf16>
      %c0_16 = arith.constant 0 : index
      %c0_17 = arith.constant 0 : index
      %22 = vector.load %arg6[%c0_16, %c0_17] : memref<8x32xbf16, #tpu.memory_space<vmem>>, vector<8x32xbf16>
      tpu.vector_store %arg6[%c0_16, %c0_17], %21 {strides = array<i32>} : memref<8x32xbf16, #tpu.memory_space<vmem>>, vector<8x32xbf16>,
      %23 = vector.extract_strided_slice %16 {offsets = [0, 64], sizes = [8, 32], strides = [1, 1]} : vector<8x96xf32> to vector<8x32xf32>
      %24 = arith.truncf %23 : vector<8x32xf32> to vector<8x32xbf16>
      %c0_18 = arith.constant 0 : index
      %c0_19 = arith.constant 0 : index
      %25 = vector.load %arg7[%c0_18, %c0_19] : memref<8x32xbf16, #tpu.memory_space<vmem>>, vector<8x32xbf16>
      tpu.vector_store %arg7[%c0_18, %c0_19], %24 {strides = array<i32>} : memref<8x32xbf16, #tpu.memory_space<vmem>>, vector<8x32xbf16>,
    } else {
    }
    return
  }
  func.func @transform_0(%arg0: i32, %arg1: i32) -> (i32, i32) {
    %c0_i32 = arith.constant 0 : i32
    return %arg0, %arg1 : i32, i32
  }
  func.func @transform_1(%arg0: i32, %arg1: i32) -> (i32, i32) {
    %c0_i32 = arith.constant 0 : i32
    %c0_i32_0 = arith.constant 0 : i32
    return %arg1, %c0_i32 : i32, i32
  }
  func.func @transform_2(%arg0: i32, %arg1: i32) -> (i32, i32) {
    %c0_i32 = arith.constant 0 : i32
    %c0_i32_0 = arith.constant 0 : i32
    %c0_i32_1 = arith.constant 0 : i32
    return %c0_i32, %c0_i32_0 : i32, i32
  }
  func.func @transform_3(%arg0: i32, %arg1: i32) -> (i32, i32) {
    %c0_i32 = arith.constant 0 : i32
    %c0_i32_0 = arith.constant 0 : i32
    return %arg0, %c0_i32 : i32, i32
  }
  func.func @transform_4(%arg0: i32, %arg1: i32) -> (i32, i32) {
    %c0_i32 = arith.constant 0 : i32
    %c0_i32_0 = arith.constant 0 : i32
    return %arg0, %c0_i32 : i32, i32
  }
  func.func @transform_5(%arg0: i32, %arg1: i32) -> (i32, i32) {
    %c0_i32 = arith.constant 0 : i32
    %c0_i32_0 = arith.constant 0 : i32
    return %arg0, %c0_i32 : i32, i32
  }
}

module attributes {stable_mosaic.version = 11 : i64} {
  func.func @_mha_kernel(%arg0: i32, %arg1: i32, %arg2: memref<1x8x32xbf16, #tpu.memory_space<vmem>>, %arg3: memref<1x8x32xbf16, #tpu.memory_space<vmem>>, %arg4: memref<1x8x32xbf16, #tpu.memory_space<vmem>>, %arg5: memref<1x8x8xbf16, #tpu.memory_space<vmem>>, %arg6: memref<1x8x32xbf16, #tpu.memory_space<vmem>>, %arg7: memref<1x4x8x8xf32, #tpu.memory_space<vmem>>, %arg8: memref<8x32xf32, #tpu.memory_space<vmem>>) attributes {dimension_semantics = [#tpu.dimension_semantics<parallel>, #tpu.dimension_semantics<parallel>], iteration_bounds = array<i64: 2, 1>, scalar_prefetch = 0 : i64, scratch_operands = 1 : i64, tpu.core_type = #tpu.core_type<tc>, window_params = [{transform_indices = @transform_0, window_bounds = array<i64: 1, 8, 32>}, {transform_indices = @transform_1, window_bounds = array<i64: 1, 8, 32>}, {transform_indices = @transform_2, window_bounds = array<i64: 1, 8, 32>}, {transform_indices = @transform_3, window_bounds = array<i64: 1, 8, 8>}, {transform_indices = @transform_4, window_bounds = array<i64: 1, 8, 32>}, {transform_indices = @transform_5, window_bounds = array<i64: 1, 4, 8, 8>}]} {
    %c0 = arith.constant 0 : index
    %c0_0 = arith.constant 0 : index
    %c0_1 = arith.constant 0 : index
    %0 = vector.load %arg2[%c0, %c0_0, %c0_1] : memref<1x8x32xbf16, #tpu.memory_space<vmem>>, vector<1x8x32xbf16>
    %1 = vector.shape_cast %0 : vector<1x8x32xbf16> to vector<8x32xbf16>
    %c0_2 = arith.constant 0 : index
    %c0_3 = arith.constant 0 : index
    %c0_4 = arith.constant 0 : index
    %2 = vector.load %arg3[%c0_2, %c0_3, %c0_4] : memref<1x8x32xbf16, #tpu.memory_space<vmem>>, vector<1x8x32xbf16>
    %3 = vector.shape_cast %2 : vector<1x8x32xbf16> to vector<8x32xbf16>
    %c0_5 = arith.constant 0 : index
    %c0_6 = arith.constant 0 : index
    %c0_7 = arith.constant 0 : index
    %4 = vector.load %arg4[%c0_5, %c0_6, %c0_7] : memref<1x8x32xbf16, #tpu.memory_space<vmem>>, vector<1x8x32xbf16>
    %5 = vector.shape_cast %4 : vector<1x8x32xbf16> to vector<8x32xbf16>
    %c0_8 = arith.constant 0 : index
    %c0_9 = arith.constant 0 : index
    %c0_10 = arith.constant 0 : index
    %6 = vector.load %arg5[%c0_8, %c0_9, %c0_10] : memref<1x8x8xbf16, #tpu.memory_space<vmem>>, vector<1x8x8xbf16>
    %7 = vector.shape_cast %6 : vector<1x8x8xbf16> to vector<8x8xbf16>
    %8 = arith.extf %7 : vector<8x8xbf16> to vector<8x8xf32>
    %9 = vector.extract_strided_slice %1 {offsets = [0, 0], sizes = [8, 8], strides = [1, 1]} : vector<8x32xbf16> to vector<8x8xbf16>
    %10 = vector.extract_strided_slice %3 {offsets = [0, 0], sizes = [8, 8], strides = [1, 1]} : vector<8x32xbf16> to vector<8x8xbf16>
    %11 = vector.extract_strided_slice %5 {offsets = [0, 0], sizes = [8, 8], strides = [1, 1]} : vector<8x32xbf16> to vector<8x8xbf16>
    %cst = arith.constant dense<0.000000e+00> : vector<8x8xf32>
    %12 = tpu.matmul %9, %10, %cst {dimension_numbers = #tpu.dot_dimension_numbers<[1], [1], [0], [0], [0, 0, 1, 0], [], []>} : vector<8x8xbf16>, vector<8x8xbf16>, vector<8x8xf32> -> vector<8x8xf32>
    %cst_11 = arith.constant 0.353553385 : f32
    %13 = vector.broadcast %cst_11 : f32 to vector<8x8xf32>
    %14 = arith.mulf %12, %13 : vector<8x8xf32>
    %15 = arith.addf %14, %8 : vector<8x8xf32>
    %cst_12 = arith.constant dense<0xFF800000> : vector<8xf32>
    %16 = vector.multi_reduction <maximumf>, %15, %cst_12 [1] : vector<8x8xf32> to vector<8xf32>
    %17 = vector.shape_cast %16 : vector<8xf32> to vector<8x1xf32>
    %18 = vector.broadcast %17 : vector<8x1xf32> to vector<8x8xf32>
    %19 = arith.subf %15, %18 : vector<8x8xf32>
    %20 = math.exp %19 : vector<8x8xf32>
    %cst_13 = arith.constant dense<0.000000e+00> : vector<8xf32>
    %21 = vector.multi_reduction <add>, %20, %cst_13 [1] : vector<8x8xf32> to vector<8xf32>
    %22 = vector.shape_cast %21 : vector<8xf32> to vector<8x1xf32>
    %23 = tpu.reciprocal %22 : vector<8x1xf32> -> vector<8x1xf32>
    %24 = vector.broadcast %23 : vector<8x1xf32> to vector<8x8xf32>
    %25 = arith.mulf %20, %24 : vector<8x8xf32>
    %c0_14 = arith.constant 0 : index
    %c0_15 = arith.constant 0 : index
    %c0_16 = arith.constant 0 : index
    %c0_17 = arith.constant 0 : index
    %26 = vector.load %arg7[%c0_14, %c0_15, %c0_16, %c0_17] : memref<1x4x8x8xf32, #tpu.memory_space<vmem>>, vector<1x1x8x8xf32>
    %27 = vector.shape_cast %26 : vector<1x1x8x8xf32> to vector<8x8xf32>
    %28 = vector.shape_cast %25 : vector<8x8xf32> to vector<1x1x8x8xf32>
    tpu.vector_store %arg7[%c0_14, %c0_15, %c0_16, %c0_17], %28 {strides = array<i32>} : memref<1x4x8x8xf32, #tpu.memory_space<vmem>>, vector<1x1x8x8xf32>,
    %29 = arith.truncf %25 : vector<8x8xf32> to vector<8x8xbf16>
    %cst_18 = arith.constant dense<0.000000e+00> : vector<8x8xf32>
    %30 = tpu.matmul %29, %11, %cst_18 {dimension_numbers = #tpu.dot_dimension_numbers<[1], [0], [0], [1], [0, 0, 1, 1], [], []>} : vector<8x8xbf16>, vector<8x8xbf16>, vector<8x8xf32> -> vector<8x8xf32>
    %c0_19 = arith.constant 0 : index
    %c0_20 = arith.constant 0 : index
    %31 = vector.load %arg8[%c0_19, %c0_20] : memref<8x32xf32, #tpu.memory_space<vmem>>, vector<8x8xf32>
    tpu.vector_store %arg8[%c0_19, %c0_20], %30 {strides = array<i32>} : memref<8x32xf32, #tpu.memory_space<vmem>>, vector<8x8xf32>,
    %32 = vector.extract_strided_slice %1 {offsets = [0, 8], sizes = [8, 8], strides = [1, 1]} : vector<8x32xbf16> to vector<8x8xbf16>
    %33 = vector.extract_strided_slice %3 {offsets = [0, 8], sizes = [8, 8], strides = [1, 1]} : vector<8x32xbf16> to vector<8x8xbf16>
    %34 = vector.extract_strided_slice %5 {offsets = [0, 8], sizes = [8, 8], strides = [1, 1]} : vector<8x32xbf16> to vector<8x8xbf16>
    %cst_21 = arith.constant dense<0.000000e+00> : vector<8x8xf32>
    %35 = tpu.matmul %32, %33, %cst_21 {dimension_numbers = #tpu.dot_dimension_numbers<[1], [1], [0], [0], [0, 0, 1, 0], [], []>} : vector<8x8xbf16>, vector<8x8xbf16>, vector<8x8xf32> -> vector<8x8xf32>
    %cst_22 = arith.constant 0.353553385 : f32
    %36 = vector.broadcast %cst_22 : f32 to vector<8x8xf32>
    %37 = arith.mulf %35, %36 : vector<8x8xf32>
    %38 = arith.addf %37, %8 : vector<8x8xf32>
    %cst_23 = arith.constant dense<0xFF800000> : vector<8xf32>
    %39 = vector.multi_reduction <maximumf>, %38, %cst_23 [1] : vector<8x8xf32> to vector<8xf32>
    %40 = vector.shape_cast %39 : vector<8xf32> to vector<8x1xf32>
    %41 = vector.broadcast %40 : vector<8x1xf32> to vector<8x8xf32>
    %42 = arith.subf %38, %41 : vector<8x8xf32>
    %43 = math.exp %42 : vector<8x8xf32>
    %cst_24 = arith.constant dense<0.000000e+00> : vector<8xf32>
    %44 = vector.multi_reduction <add>, %43, %cst_24 [1] : vector<8x8xf32> to vector<8xf32>
    %45 = vector.shape_cast %44 : vector<8xf32> to vector<8x1xf32>
    %46 = tpu.reciprocal %45 : vector<8x1xf32> -> vector<8x1xf32>
    %47 = vector.broadcast %46 : vector<8x1xf32> to vector<8x8xf32>
    %48 = arith.mulf %43, %47 : vector<8x8xf32>
    %c0_25 = arith.constant 0 : index
    %c1 = arith.constant 1 : index
    %c0_26 = arith.constant 0 : index
    %c0_27 = arith.constant 0 : index
    %49 = vector.load %arg7[%c0_25, %c1, %c0_26, %c0_27] : memref<1x4x8x8xf32, #tpu.memory_space<vmem>>, vector<1x1x8x8xf32>
    %50 = vector.shape_cast %49 : vector<1x1x8x8xf32> to vector<8x8xf32>
    %51 = vector.shape_cast %48 : vector<8x8xf32> to vector<1x1x8x8xf32>
    tpu.vector_store %arg7[%c0_25, %c1, %c0_26, %c0_27], %51 {strides = array<i32>} : memref<1x4x8x8xf32, #tpu.memory_space<vmem>>, vector<1x1x8x8xf32>,
    %52 = arith.truncf %48 : vector<8x8xf32> to vector<8x8xbf16>
    %cst_28 = arith.constant dense<0.000000e+00> : vector<8x8xf32>
    %53 = tpu.matmul %52, %34, %cst_28 {dimension_numbers = #tpu.dot_dimension_numbers<[1], [0], [0], [1], [0, 0, 1, 1], [], []>} : vector<8x8xbf16>, vector<8x8xbf16>, vector<8x8xf32> -> vector<8x8xf32>
    %c0_29 = arith.constant 0 : index
    %c8 = arith.constant 8 : index
    %54 = vector.load %arg8[%c0_29, %c8] : memref<8x32xf32, #tpu.memory_space<vmem>>, vector<8x8xf32>
    tpu.vector_store %arg8[%c0_29, %c8], %53 {strides = array<i32>} : memref<8x32xf32, #tpu.memory_space<vmem>>, vector<8x8xf32>,
    %55 = vector.extract_strided_slice %1 {offsets = [0, 16], sizes = [8, 8], strides = [1, 1]} : vector<8x32xbf16> to vector<8x8xbf16>
    %56 = vector.extract_strided_slice %3 {offsets = [0, 16], sizes = [8, 8], strides = [1, 1]} : vector<8x32xbf16> to vector<8x8xbf16>
    %57 = vector.extract_strided_slice %5 {offsets = [0, 16], sizes = [8, 8], strides = [1, 1]} : vector<8x32xbf16> to vector<8x8xbf16>
    %cst_30 = arith.constant dense<0.000000e+00> : vector<8x8xf32>
    %58 = tpu.matmul %55, %56, %cst_30 {dimension_numbers = #tpu.dot_dimension_numbers<[1], [1], [0], [0], [0, 0, 1, 0], [], []>} : vector<8x8xbf16>, vector<8x8xbf16>, vector<8x8xf32> -> vector<8x8xf32>
    %cst_31 = arith.constant 0.353553385 : f32
    %59 = vector.broadcast %cst_31 : f32 to vector<8x8xf32>
    %60 = arith.mulf %58, %59 : vector<8x8xf32>
    %61 = arith.addf %60, %8 : vector<8x8xf32>
    %cst_32 = arith.constant dense<0xFF800000> : vector<8xf32>
    %62 = vector.multi_reduction <maximumf>, %61, %cst_32 [1] : vector<8x8xf32> to vector<8xf32>
    %63 = vector.shape_cast %62 : vector<8xf32> to vector<8x1xf32>
    %64 = vector.broadcast %63 : vector<8x1xf32> to vector<8x8xf32>
    %65 = arith.subf %61, %64 : vector<8x8xf32>
    %66 = math.exp %65 : vector<8x8xf32>
    %cst_33 = arith.constant dense<0.000000e+00> : vector<8xf32>
    %67 = vector.multi_reduction <add>, %66, %cst_33 [1] : vector<8x8xf32> to vector<8xf32>
    %68 = vector.shape_cast %67 : vector<8xf32> to vector<8x1xf32>
    %69 = tpu.reciprocal %68 : vector<8x1xf32> -> vector<8x1xf32>
    %70 = vector.broadcast %69 : vector<8x1xf32> to vector<8x8xf32>
    %71 = arith.mulf %66, %70 : vector<8x8xf32>
    %c0_34 = arith.constant 0 : index
    %c2 = arith.constant 2 : index
    %c0_35 = arith.constant 0 : index
    %c0_36 = arith.constant 0 : index
    %72 = vector.load %arg7[%c0_34, %c2, %c0_35, %c0_36] : memref<1x4x8x8xf32, #tpu.memory_space<vmem>>, vector<1x1x8x8xf32>
    %73 = vector.shape_cast %72 : vector<1x1x8x8xf32> to vector<8x8xf32>
    %74 = vector.shape_cast %71 : vector<8x8xf32> to vector<1x1x8x8xf32>
    tpu.vector_store %arg7[%c0_34, %c2, %c0_35, %c0_36], %74 {strides = array<i32>} : memref<1x4x8x8xf32, #tpu.memory_space<vmem>>, vector<1x1x8x8xf32>,
    %75 = arith.truncf %71 : vector<8x8xf32> to vector<8x8xbf16>
    %cst_37 = arith.constant dense<0.000000e+00> : vector<8x8xf32>
    %76 = tpu.matmul %75, %57, %cst_37 {dimension_numbers = #tpu.dot_dimension_numbers<[1], [0], [0], [1], [0, 0, 1, 1], [], []>} : vector<8x8xbf16>, vector<8x8xbf16>, vector<8x8xf32> -> vector<8x8xf32>
    %c0_38 = arith.constant 0 : index
    %c16 = arith.constant 16 : index
    %77 = vector.load %arg8[%c0_38, %c16] : memref<8x32xf32, #tpu.memory_space<vmem>>, vector<8x8xf32>
    tpu.vector_store %arg8[%c0_38, %c16], %76 {strides = array<i32>} : memref<8x32xf32, #tpu.memory_space<vmem>>, vector<8x8xf32>,
    %78 = vector.extract_strided_slice %1 {offsets = [0, 24], sizes = [8, 8], strides = [1, 1]} : vector<8x32xbf16> to vector<8x8xbf16>
    %79 = vector.extract_strided_slice %3 {offsets = [0, 24], sizes = [8, 8], strides = [1, 1]} : vector<8x32xbf16> to vector<8x8xbf16>
    %80 = vector.extract_strided_slice %5 {offsets = [0, 24], sizes = [8, 8], strides = [1, 1]} : vector<8x32xbf16> to vector<8x8xbf16>
    %cst_39 = arith.constant dense<0.000000e+00> : vector<8x8xf32>
    %81 = tpu.matmul %78, %79, %cst_39 {dimension_numbers = #tpu.dot_dimension_numbers<[1], [1], [0], [0], [0, 0, 1, 0], [], []>} : vector<8x8xbf16>, vector<8x8xbf16>, vector<8x8xf32> -> vector<8x8xf32>
    %cst_40 = arith.constant 0.353553385 : f32
    %82 = vector.broadcast %cst_40 : f32 to vector<8x8xf32>
    %83 = arith.mulf %81, %82 : vector<8x8xf32>
    %84 = arith.addf %83, %8 : vector<8x8xf32>
    %cst_41 = arith.constant dense<0xFF800000> : vector<8xf32>
    %85 = vector.multi_reduction <maximumf>, %84, %cst_41 [1] : vector<8x8xf32> to vector<8xf32>
    %86 = vector.shape_cast %85 : vector<8xf32> to vector<8x1xf32>
    %87 = vector.broadcast %86 : vector<8x1xf32> to vector<8x8xf32>
    %88 = arith.subf %84, %87 : vector<8x8xf32>
    %89 = math.exp %88 : vector<8x8xf32>
    %cst_42 = arith.constant dense<0.000000e+00> : vector<8xf32>
    %90 = vector.multi_reduction <add>, %89, %cst_42 [1] : vector<8x8xf32> to vector<8xf32>
    %91 = vector.shape_cast %90 : vector<8xf32> to vector<8x1xf32>
    %92 = tpu.reciprocal %91 : vector<8x1xf32> -> vector<8x1xf32>
    %93 = vector.broadcast %92 : vector<8x1xf32> to vector<8x8xf32>
    %94 = arith.mulf %89, %93 : vector<8x8xf32>
    %c0_43 = arith.constant 0 : index
    %c3 = arith.constant 3 : index
    %c0_44 = arith.constant 0 : index
    %c0_45 = arith.constant 0 : index
    %95 = vector.load %arg7[%c0_43, %c3, %c0_44, %c0_45] : memref<1x4x8x8xf32, #tpu.memory_space<vmem>>, vector<1x1x8x8xf32>
    %96 = vector.shape_cast %95 : vector<1x1x8x8xf32> to vector<8x8xf32>
    %97 = vector.shape_cast %94 : vector<8x8xf32> to vector<1x1x8x8xf32>
    tpu.vector_store %arg7[%c0_43, %c3, %c0_44, %c0_45], %97 {strides = array<i32>} : memref<1x4x8x8xf32, #tpu.memory_space<vmem>>, vector<1x1x8x8xf32>,
    %98 = arith.truncf %94 : vector<8x8xf32> to vector<8x8xbf16>
    %cst_46 = arith.constant dense<0.000000e+00> : vector<8x8xf32>
    %99 = tpu.matmul %98, %80, %cst_46 {dimension_numbers = #tpu.dot_dimension_numbers<[1], [0], [0], [1], [0, 0, 1, 1], [], []>} : vector<8x8xbf16>, vector<8x8xbf16>, vector<8x8xf32> -> vector<8x8xf32>
    %c0_47 = arith.constant 0 : index
    %c24 = arith.constant 24 : index
    %100 = vector.load %arg8[%c0_47, %c24] : memref<8x32xf32, #tpu.memory_space<vmem>>, vector<8x8xf32>
    tpu.vector_store %arg8[%c0_47, %c24], %99 {strides = array<i32>} : memref<8x32xf32, #tpu.memory_space<vmem>>, vector<8x8xf32>,
    %c0_48 = arith.constant 0 : index
    %c0_49 = arith.constant 0 : index
    %101 = vector.load %arg8[%c0_48, %c0_49] : memref<8x32xf32, #tpu.memory_space<vmem>>, vector<8x32xf32>
    %102 = arith.truncf %101 : vector<8x32xf32> to vector<8x32xbf16>
    %c0_50 = arith.constant 0 : index
    %c0_51 = arith.constant 0 : index
    %c0_52 = arith.constant 0 : index
    %103 = vector.load %arg6[%c0_50, %c0_51, %c0_52] : memref<1x8x32xbf16, #tpu.memory_space<vmem>>, vector<1x8x32xbf16>
    %104 = vector.shape_cast %103 : vector<1x8x32xbf16> to vector<8x32xbf16>
    %105 = vector.shape_cast %102 : vector<8x32xbf16> to vector<1x8x32xbf16>
    tpu.vector_store %arg6[%c0_50, %c0_51, %c0_52], %105 {strides = array<i32>} : memref<1x8x32xbf16, #tpu.memory_space<vmem>>, vector<1x8x32xbf16>,
    return
  }
  func.func @transform_0(%arg0: i32, %arg1: i32) -> (i32, i32, i32) {
    %c0_i32 = arith.constant 0 : i32
    %c0_i32_0 = arith.constant 0 : i32
    return %arg0, %arg1, %c0_i32 : i32, i32, i32
  }
  func.func @transform_1(%arg0: i32, %arg1: i32) -> (i32, i32, i32) {
    %c0_i32 = arith.constant 0 : i32
    %c0_i32_0 = arith.constant 0 : i32
    %c0_i32_1 = arith.constant 0 : i32
    return %arg0, %c0_i32, %c0_i32_0 : i32, i32, i32
  }
  func.func @transform_2(%arg0: i32, %arg1: i32) -> (i32, i32, i32) {
    %c0_i32 = arith.constant 0 : i32
    %c0_i32_0 = arith.constant 0 : i32
    %c0_i32_1 = arith.constant 0 : i32
    return %arg0, %c0_i32, %c0_i32_0 : i32, i32, i32
  }
  func.func @transform_3(%arg0: i32, %arg1: i32) -> (i32, i32, i32) {
    %c0_i32 = arith.constant 0 : i32
    %c0_i32_0 = arith.constant 0 : i32
    return %arg0, %arg1, %c0_i32 : i32, i32, i32
  }
  func.func @transform_4(%arg0: i32, %arg1: i32) -> (i32, i32, i32) {
    %c0_i32 = arith.constant 0 : i32
    %c0_i32_0 = arith.constant 0 : i32
    return %arg0, %arg1, %c0_i32 : i32, i32, i32
  }
  func.func @transform_5(%arg0: i32, %arg1: i32) -> (i32, i32, i32, i32) {
    %c0_i32 = arith.constant 0 : i32
    %c0_i32_0 = arith.constant 0 : i32
    %c0_i32_1 = arith.constant 0 : i32
    return %arg0, %c0_i32, %arg1, %c0_i32_0 : i32, i32, i32, i32
  }
}

module attributes {stable_mosaic.version = 11 : i64} {
  func.func @_proj_add_ln_kernel(%arg0: i32, %arg1: i32, %arg2: memref<8x32xbf16, #tpu.memory_space<vmem>>, %arg3: memref<32x32xbf16, #tpu.memory_space<vmem>>, %arg4: memref<1x32xf32, #tpu.memory_space<vmem>>, %arg5: memref<8x32xf32, #tpu.memory_space<vmem>>, %arg6: memref<1x32xf32, #tpu.memory_space<vmem>>, %arg7: memref<1x32xf32, #tpu.memory_space<vmem>>, %arg8: memref<8x32xf32, #tpu.memory_space<vmem>>, %arg9: memref<8x32xf32, #tpu.memory_space<vmem>>) attributes {dimension_semantics = [#tpu.dimension_semantics<parallel>, #tpu.dimension_semantics<arbitrary>], iteration_bounds = array<i64: 2, 1>, scalar_prefetch = 0 : i64, scratch_operands = 1 : i64, tpu.core_type = #tpu.core_type<tc>, window_params = [{transform_indices = @transform_0, window_bounds = array<i64: 8, 32>}, {transform_indices = @transform_1, window_bounds = array<i64: 32, 32>}, {pipeline_mode = #tpu.pipeline_mode<synchronous>, transform_indices = @transform_2, window_bounds = array<i64: 1, 32>}, {transform_indices = @transform_3, window_bounds = array<i64: 8, 32>}, {pipeline_mode = #tpu.pipeline_mode<synchronous>, transform_indices = @transform_4, window_bounds = array<i64: 1, 32>}, {pipeline_mode = #tpu.pipeline_mode<synchronous>, transform_indices = @transform_5, window_bounds = array<i64: 1, 32>}, {transform_indices = @transform_6, window_bounds = array<i64: 8, 32>}]} {
    %c0_i32 = arith.constant 0 : i32
    %0 = arith.cmpi eq, %arg1, %c0_i32 : i32
    %1 = arith.extui %0 : i1 to i32
    %c0_i32_0 = arith.constant 0 : i32
    %2 = arith.cmpi ne, %1, %c0_i32_0 : i32
    scf.if %2 {
      %cst_10 = arith.constant 0.000000e+00 : f32
      %12 = vector.broadcast %cst_10 : f32 to vector<8x32xf32>
      %c0_11 = arith.constant 0 : index
      %c0_12 = arith.constant 0 : index
      %13 = vector.load %arg9[%c0_11, %c0_12] : memref<8x32xf32, #tpu.memory_space<vmem>>, vector<8x32xf32>
      tpu.vector_store %arg9[%c0_11, %c0_12], %12 {strides = array<i32>} : memref<8x32xf32, #tpu.memory_space<vmem>>, vector<8x32xf32>,
    } else {
    }
    %c0 = arith.constant 0 : index
    %c0_1 = arith.constant 0 : index
    %3 = vector.load %arg9[%c0, %c0_1] : memref<8x32xf32, #tpu.memory_space<vmem>>, vector<8x32xf32>
    %c0_2 = arith.constant 0 : index
    %c0_3 = arith.constant 0 : index
    %4 = vector.load %arg2[%c0_2, %c0_3] : memref<8x32xbf16, #tpu.memory_space<vmem>>, vector<8x32xbf16>
    %c0_4 = arith.constant 0 : index
    %c0_5 = arith.constant 0 : index
    %5 = vector.load %arg3[%c0_4, %c0_5] : memref<32x32xbf16, #tpu.memory_space<vmem>>, vector<32x32xbf16>
    %cst = arith.constant dense<0.000000e+00> : vector<8x32xf32>
    %6 = tpu.matmul %4, %5, %cst {dimension_numbers = #tpu.dot_dimension_numbers<[1], [0], [0], [1], [0, 0, 1, 1], [], []>} : vector<8x32xbf16>, vector<32x32xbf16>, vector<8x32xf32> -> vector<8x32xf32>
    %7 = arith.addf %3, %6 : vector<8x32xf32>
    %c0_6 = arith.constant 0 : index
    %c0_7 = arith.constant 0 : index
    %8 = vector.load %arg9[%c0_6, %c0_7] : memref<8x32xf32, #tpu.memory_space<vmem>>, vector<8x32xf32>
    tpu.vector_store %arg9[%c0_6, %c0_7], %7 {strides = array<i32>} : memref<8x32xf32, #tpu.memory_space<vmem>>, vector<8x32xf32>,
    %c0_i32_8 = arith.constant 0 : i32
    %9 = arith.cmpi eq, %arg1, %c0_i32_8 : i32
    %10 = arith.extui %9 : i1 to i32
    %c0_i32_9 = arith.constant 0 : i32
    %11 = arith.cmpi ne, %10, %c0_i32_9 : i32
    scf.if %11 {
      %c0_10 = arith.constant 0 : index
      %c0_11 = arith.constant 0 : index
      %12 = vector.load %arg9[%c0_10, %c0_11] : memref<8x32xf32, #tpu.memory_space<vmem>>, vector<8x32xf32>
      %c0_12 = arith.constant 0 : index
      %c0_13 = arith.constant 0 : index
      %13 = vector.load %arg4[%c0_12, %c0_13] : memref<1x32xf32, #tpu.memory_space<vmem>>, vector<1x32xf32>
      %14 = vector.broadcast %13 : vector<1x32xf32> to vector<8x32xf32>
      %15 = arith.addf %12, %14 : vector<8x32xf32>
      %c0_14 = arith.constant 0 : index
      %c0_15 = arith.constant 0 : index
      %16 = vector.load %arg5[%c0_14, %c0_15] : memref<8x32xf32, #tpu.memory_space<vmem>>, vector<8x32xf32>
      %17 = arith.addf %15, %16 : vector<8x32xf32>
      %cst_16 = arith.constant dense<0.000000e+00> : vector<8xf32>
      %18 = vector.multi_reduction <add>, %17, %cst_16 [1] : vector<8x32xf32> to vector<8xf32>
      %19 = vector.shape_cast %18 : vector<8xf32> to vector<8x1xf32>
      %cst_17 = arith.constant 3.200000e+01 : f32
      %20 = vector.broadcast %cst_17 : f32 to vector<8x1xf32>
      %21 = arith.divf %19, %20 : vector<8x1xf32>
      %22 = vector.broadcast %21 : vector<8x1xf32> to vector<8x32xf32>
      %23 = arith.subf %17, %22 : vector<8x32xf32>
      %24 = arith.mulf %23, %23 : vector<8x32xf32>
      %cst_18 = arith.constant dense<0.000000e+00> : vector<8xf32>
      %25 = vector.multi_reduction <add>, %24, %cst_18 [1] : vector<8x32xf32> to vector<8xf32>
      %26 = vector.shape_cast %25 : vector<8xf32> to vector<8x1xf32>
      %cst_19 = arith.constant 3.200000e+01 : f32
      %27 = vector.broadcast %cst_19 : f32 to vector<8x1xf32>
      %28 = arith.divf %26, %27 : vector<8x1xf32>
      %29 = vector.broadcast %21 : vector<8x1xf32> to vector<8x32xf32>
      %30 = arith.subf %17, %29 : vector<8x32xf32>
      %cst_20 = arith.constant 9.99999974E-6 : f32
      %31 = vector.broadcast %cst_20 : f32 to vector<8x1xf32>
      %32 = arith.addf %28, %31 : vector<8x1xf32>
      %33 = math.rsqrt %32 : vector<8x1xf32>
      %34 = vector.broadcast %33 : vector<8x1xf32> to vector<8x32xf32>
      %35 = arith.mulf %30, %34 : vector<8x32xf32>
      %c0_21 = arith.constant 0 : index
      %c0_22 = arith.constant 0 : index
      %36 = vector.load %arg6[%c0_21, %c0_22] : memref<1x32xf32, #tpu.memory_space<vmem>>, vector<1x32xf32>
      %37 = vector.broadcast %36 : vector<1x32xf32> to vector<8x32xf32>
      %38 = arith.mulf %35, %37 : vector<8x32xf32>
      %c0_23 = arith.constant 0 : index
      %c0_24 = arith.constant 0 : index
      %39 = vector.load %arg7[%c0_23, %c0_24] : memref<1x32xf32, #tpu.memory_space<vmem>>, vector<1x32xf32>
      %40 = vector.broadcast %39 : vector<1x32xf32> to vector<8x32xf32>
      %41 = arith.addf %38, %40 : vector<8x32xf32>
      %c0_25 = arith.constant 0 : index
      %c0_26 = arith.constant 0 : index
      %42 = vector.load %arg8[%c0_25, %c0_26] : memref<8x32xf32, #tpu.memory_space<vmem>>, vector<8x32xf32>
      tpu.vector_store %arg8[%c0_25, %c0_26], %41 {strides = array<i32>} : memref<8x32xf32, #tpu.memory_space<vmem>>, vector<8x32xf32>,
    } else {
    }
    return
  }
  func.func @transform_0(%arg0: i32, %arg1: i32) -> (i32, i32) {
    %c0_i32 = arith.constant 0 : i32
    return %arg0, %arg1 : i32, i32
  }
  func.func @transform_1(%arg0: i32, %arg1: i32) -> (i32, i32) {
    %c0_i32 = arith.constant 0 : i32
    %c0_i32_0 = arith.constant 0 : i32
    return %arg1, %c0_i32 : i32, i32
  }
  func.func @transform_2(%arg0: i32, %arg1: i32) -> (i32, i32) {
    %c0_i32 = arith.constant 0 : i32
    %c0_i32_0 = arith.constant 0 : i32
    %c0_i32_1 = arith.constant 0 : i32
    return %c0_i32, %c0_i32_0 : i32, i32
  }
  func.func @transform_3(%arg0: i32, %arg1: i32) -> (i32, i32) {
    %c0_i32 = arith.constant 0 : i32
    %c0_i32_0 = arith.constant 0 : i32
    return %arg0, %c0_i32 : i32, i32
  }
  func.func @transform_4(%arg0: i32, %arg1: i32) -> (i32, i32) {
    %c0_i32 = arith.constant 0 : i32
    %c0_i32_0 = arith.constant 0 : i32
    %c0_i32_1 = arith.constant 0 : i32
    return %c0_i32, %c0_i32_0 : i32, i32
  }
  func.func @transform_5(%arg0: i32, %arg1: i32) -> (i32, i32) {
    %c0_i32 = arith.constant 0 : i32
    %c0_i32_0 = arith.constant 0 : i32
    %c0_i32_1 = arith.constant 0 : i32
    return %c0_i32, %c0_i32_0 : i32, i32
  }
  func.func @transform_6(%arg0: i32, %arg1: i32) -> (i32, i32) {
    %c0_i32 = arith.constant 0 : i32
    %c0_i32_0 = arith.constant 0 : i32
    return %arg0, %c0_i32 : i32, i32
  }
}

module attributes {stable_mosaic.version = 11 : i64} {
  func.func @_linear_nk_kernel(%arg0: i32, %arg1: i32, %arg2: i32, %arg3: memref<8x32xf32, #tpu.memory_space<vmem>>, %arg4: memref<32x32xbf16, #tpu.memory_space<vmem>>, %arg5: memref<1x32xf32, #tpu.memory_space<vmem>>, %arg6: memref<8x32xbf16, #tpu.memory_space<vmem>>, %arg7: memref<8x32xf32, #tpu.memory_space<vmem>>) attributes {dimension_semantics = [#tpu.dimension_semantics<parallel>, #tpu.dimension_semantics<parallel>, #tpu.dimension_semantics<arbitrary>], iteration_bounds = array<i64: 2, 1, 1>, scalar_prefetch = 0 : i64, scratch_operands = 1 : i64, tpu.core_type = #tpu.core_type<tc>, window_params = [{transform_indices = @transform_0, window_bounds = array<i64: 8, 32>}, {transform_indices = @transform_1, window_bounds = array<i64: 32, 32>}, {transform_indices = @transform_2, window_bounds = array<i64: 1, 32>}, {transform_indices = @transform_3, window_bounds = array<i64: 8, 32>}]} {
    %c0_i32 = arith.constant 0 : i32
    %0 = arith.cmpi eq, %arg2, %c0_i32 : i32
    %1 = arith.extui %0 : i1 to i32
    %c0_i32_0 = arith.constant 0 : i32
    %2 = arith.cmpi ne, %1, %c0_i32_0 : i32
    scf.if %2 {
      %cst_10 = arith.constant 0.000000e+00 : f32
      %13 = vector.broadcast %cst_10 : f32 to vector<8x32xf32>
      %c0_11 = arith.constant 0 : index
      %c0_12 = arith.constant 0 : index
      %14 = vector.load %arg7[%c0_11, %c0_12] : memref<8x32xf32, #tpu.memory_space<vmem>>, vector<8x32xf32>
      tpu.vector_store %arg7[%c0_11, %c0_12], %13 {strides = array<i32>} : memref<8x32xf32, #tpu.memory_space<vmem>>, vector<8x32xf32>,
    } else {
    }
    %c0 = arith.constant 0 : index
    %c0_1 = arith.constant 0 : index
    %3 = vector.load %arg7[%c0, %c0_1] : memref<8x32xf32, #tpu.memory_space<vmem>>, vector<8x32xf32>
    %c0_2 = arith.constant 0 : index
    %c0_3 = arith.constant 0 : index
    %4 = vector.load %arg3[%c0_2, %c0_3] : memref<8x32xf32, #tpu.memory_space<vmem>>, vector<8x32xf32>
    %5 = arith.truncf %4 : vector<8x32xf32> to vector<8x32xbf16>
    %c0_4 = arith.constant 0 : index
    %c0_5 = arith.constant 0 : index
    %6 = vector.load %arg4[%c0_4, %c0_5] : memref<32x32xbf16, #tpu.memory_space<vmem>>, vector<32x32xbf16>
    %cst = arith.constant dense<0.000000e+00> : vector<8x32xf32>
    %7 = tpu.matmul %5, %6, %cst {dimension_numbers = #tpu.dot_dimension_numbers<[1], [0], [0], [1], [0, 0, 1, 1], [], []>} : vector<8x32xbf16>, vector<32x32xbf16>, vector<8x32xf32> -> vector<8x32xf32>
    %8 = arith.addf %3, %7 : vector<8x32xf32>
    %c0_6 = arith.constant 0 : index
    %c0_7 = arith.constant 0 : index
    %9 = vector.load %arg7[%c0_6, %c0_7] : memref<8x32xf32, #tpu.memory_space<vmem>>, vector<8x32xf32>
    tpu.vector_store %arg7[%c0_6, %c0_7], %8 {strides = array<i32>} : memref<8x32xf32, #tpu.memory_space<vmem>>, vector<8x32xf32>,
    %c0_i32_8 = arith.constant 0 : i32
    %10 = arith.cmpi eq, %arg2, %c0_i32_8 : i32
    %11 = arith.extui %10 : i1 to i32
    %c0_i32_9 = arith.constant 0 : i32
    %12 = arith.cmpi ne, %11, %c0_i32_9 : i32
    scf.if %12 {
      %c0_10 = arith.constant 0 : index
      %c0_11 = arith.constant 0 : index
      %13 = vector.load %arg7[%c0_10, %c0_11] : memref<8x32xf32, #tpu.memory_space<vmem>>, vector<8x32xf32>
      %c0_12 = arith.constant 0 : index
      %c0_13 = arith.constant 0 : index
      %14 = vector.load %arg5[%c0_12, %c0_13] : memref<1x32xf32, #tpu.memory_space<vmem>>, vector<1x32xf32>
      %15 = vector.broadcast %14 : vector<1x32xf32> to vector<8x32xf32>
      %16 = arith.addf %13, %15 : vector<8x32xf32>
      %17 = arith.truncf %16 : vector<8x32xf32> to vector<8x32xbf16>
      %c0_14 = arith.constant 0 : index
      %c0_15 = arith.constant 0 : index
      %18 = vector.load %arg6[%c0_14, %c0_15] : memref<8x32xbf16, #tpu.memory_space<vmem>>, vector<8x32xbf16>
      tpu.vector_store %arg6[%c0_14, %c0_15], %17 {strides = array<i32>} : memref<8x32xbf16, #tpu.memory_space<vmem>>, vector<8x32xbf16>,
    } else {
    }
    return
  }
  func.func @transform_0(%arg0: i32, %arg1: i32, %arg2: i32) -> (i32, i32) {
    %c0_i32 = arith.constant 0 : i32
    return %arg0, %arg2 : i32, i32
  }
  func.func @transform_1(%arg0: i32, %arg1: i32, %arg2: i32) -> (i32, i32) {
    %c0_i32 = arith.constant 0 : i32
    return %arg2, %arg1 : i32, i32
  }
  func.func @transform_2(%arg0: i32, %arg1: i32, %arg2: i32) -> (i32, i32) {
    %c0_i32 = arith.constant 0 : i32
    %c0_i32_0 = arith.constant 0 : i32
    return %c0_i32, %arg1 : i32, i32
  }
  func.func @transform_3(%arg0: i32, %arg1: i32, %arg2: i32) -> (i32, i32) {
    %c0_i32 = arith.constant 0 : i32
    return %arg0, %arg1 : i32, i32
  }
}

module attributes {stable_mosaic.version = 11 : i64} {
  func.func @_fused_linear_kernel(%arg0: i32, %arg1: i32, %arg2: memref<8x32xf32, #tpu.memory_space<vmem>>, %arg3: memref<32x64xbf16, #tpu.memory_space<vmem>>, %arg4: memref<1x64xf32, #tpu.memory_space<vmem>>, %arg5: memref<8x32xbf16, #tpu.memory_space<vmem>>, %arg6: memref<8x32xbf16, #tpu.memory_space<vmem>>, %arg7: memref<8x64xf32, #tpu.memory_space<vmem>>) attributes {dimension_semantics = [#tpu.dimension_semantics<parallel>, #tpu.dimension_semantics<arbitrary>], iteration_bounds = array<i64: 2, 1>, scalar_prefetch = 0 : i64, scratch_operands = 1 : i64, tpu.core_type = #tpu.core_type<tc>, window_params = [{transform_indices = @transform_0, window_bounds = array<i64: 8, 32>}, {transform_indices = @transform_1, window_bounds = array<i64: 32, 64>}, {pipeline_mode = #tpu.pipeline_mode<synchronous>, transform_indices = @transform_2, window_bounds = array<i64: 1, 64>}, {transform_indices = @transform_3, window_bounds = array<i64: 8, 32>}, {transform_indices = @transform_4, window_bounds = array<i64: 8, 32>}]} {
    %c0_i32 = arith.constant 0 : i32
    %0 = arith.cmpi eq, %arg1, %c0_i32 : i32
    %1 = arith.extui %0 : i1 to i32
    %c0_i32_0 = arith.constant 0 : i32
    %2 = arith.cmpi ne, %1, %c0_i32_0 : i32
    scf.if %2 {
      %cst_10 = arith.constant 0.000000e+00 : f32
      %13 = vector.broadcast %cst_10 : f32 to vector<8x64xf32>
      %c0_11 = arith.constant 0 : index
      %c0_12 = arith.constant 0 : index
      %14 = vector.load %arg7[%c0_11, %c0_12] : memref<8x64xf32, #tpu.memory_space<vmem>>, vector<8x64xf32>
      tpu.vector_store %arg7[%c0_11, %c0_12], %13 {strides = array<i32>} : memref<8x64xf32, #tpu.memory_space<vmem>>, vector<8x64xf32>,
    } else {
    }
    %c0 = arith.constant 0 : index
    %c0_1 = arith.constant 0 : index
    %3 = vector.load %arg7[%c0, %c0_1] : memref<8x64xf32, #tpu.memory_space<vmem>>, vector<8x64xf32>
    %c0_2 = arith.constant 0 : index
    %c0_3 = arith.constant 0 : index
    %4 = vector.load %arg2[%c0_2, %c0_3] : memref<8x32xf32, #tpu.memory_space<vmem>>, vector<8x32xf32>
    %5 = arith.truncf %4 : vector<8x32xf32> to vector<8x32xbf16>
    %c0_4 = arith.constant 0 : index
    %c0_5 = arith.constant 0 : index
    %6 = vector.load %arg3[%c0_4, %c0_5] : memref<32x64xbf16, #tpu.memory_space<vmem>>, vector<32x64xbf16>
    %cst = arith.constant dense<0.000000e+00> : vector<8x64xf32>
    %7 = tpu.matmul %5, %6, %cst {dimension_numbers = #tpu.dot_dimension_numbers<[1], [0], [0], [1], [0, 0, 1, 1], [], []>} : vector<8x32xbf16>, vector<32x64xbf16>, vector<8x64xf32> -> vector<8x64xf32>
    %8 = arith.addf %3, %7 : vector<8x64xf32>
    %c0_6 = arith.constant 0 : index
    %c0_7 = arith.constant 0 : index
    %9 = vector.load %arg7[%c0_6, %c0_7] : memref<8x64xf32, #tpu.memory_space<vmem>>, vector<8x64xf32>
    tpu.vector_store %arg7[%c0_6, %c0_7], %8 {strides = array<i32>} : memref<8x64xf32, #tpu.memory_space<vmem>>, vector<8x64xf32>,
    %c0_i32_8 = arith.constant 0 : i32
    %10 = arith.cmpi eq, %arg1, %c0_i32_8 : i32
    %11 = arith.extui %10 : i1 to i32
    %c0_i32_9 = arith.constant 0 : i32
    %12 = arith.cmpi ne, %11, %c0_i32_9 : i32
    scf.if %12 {
      %c0_10 = arith.constant 0 : index
      %c0_11 = arith.constant 0 : index
      %13 = vector.load %arg7[%c0_10, %c0_11] : memref<8x64xf32, #tpu.memory_space<vmem>>, vector<8x64xf32>
      %c0_12 = arith.constant 0 : index
      %c0_13 = arith.constant 0 : index
      %14 = vector.load %arg4[%c0_12, %c0_13] : memref<1x64xf32, #tpu.memory_space<vmem>>, vector<1x64xf32>
      %15 = vector.broadcast %14 : vector<1x64xf32> to vector<8x64xf32>
      %16 = arith.addf %13, %15 : vector<8x64xf32>
      %17 = vector.extract_strided_slice %16 {offsets = [0, 0], sizes = [8, 32], strides = [1, 1]} : vector<8x64xf32> to vector<8x32xf32>
      %18 = arith.truncf %17 : vector<8x32xf32> to vector<8x32xbf16>
      %c0_14 = arith.constant 0 : index
      %c0_15 = arith.constant 0 : index
      %19 = vector.load %arg5[%c0_14, %c0_15] : memref<8x32xbf16, #tpu.memory_space<vmem>>, vector<8x32xbf16>
      tpu.vector_store %arg5[%c0_14, %c0_15], %18 {strides = array<i32>} : memref<8x32xbf16, #tpu.memory_space<vmem>>, vector<8x32xbf16>,
      %20 = vector.extract_strided_slice %16 {offsets = [0, 32], sizes = [8, 32], strides = [1, 1]} : vector<8x64xf32> to vector<8x32xf32>
      %21 = arith.truncf %20 : vector<8x32xf32> to vector<8x32xbf16>
      %c0_16 = arith.constant 0 : index
      %c0_17 = arith.constant 0 : index
      %22 = vector.load %arg6[%c0_16, %c0_17] : memref<8x32xbf16, #tpu.memory_space<vmem>>, vector<8x32xbf16>
      tpu.vector_store %arg6[%c0_16, %c0_17], %21 {strides = array<i32>} : memref<8x32xbf16, #tpu.memory_space<vmem>>, vector<8x32xbf16>,
    } else {
    }
    return
  }
  func.func @transform_0(%arg0: i32, %arg1: i32) -> (i32, i32) {
    %c0_i32 = arith.constant 0 : i32
    return %arg0, %arg1 : i32, i32
  }
  func.func @transform_1(%arg0: i32, %arg1: i32) -> (i32, i32) {
    %c0_i32 = arith.constant 0 : i32
    %c0_i32_0 = arith.constant 0 : i32
    return %arg1, %c0_i32 : i32, i32
  }
  func.func @transform_2(%arg0: i32, %arg1: i32) -> (i32, i32) {
    %c0_i32 = arith.constant 0 : i32
    %c0_i32_0 = arith.constant 0 : i32
    %c0_i32_1 = arith.constant 0 : i32
    return %c0_i32, %c0_i32_0 : i32, i32
  }
  func.func @transform_3(%arg0: i32, %arg1: i32) -> (i32, i32) {
    %c0_i32 = arith.constant 0 : i32
    %c0_i32_0 = arith.constant 0 : i32
    return %arg0, %c0_i32 : i32, i32
  }
  func.func @transform_4(%arg0: i32, %arg1: i32) -> (i32, i32) {
    %c0_i32 = arith.constant 0 : i32
    %c0_i32_0 = arith.constant 0 : i32
    return %arg0, %c0_i32 : i32, i32
  }
}

module attributes {stable_mosaic.version = 11 : i64} {
  func.func @_ffn_add_ln_kernel(%arg0: i32, %arg1: i32, %arg2: memref<8x32xf32, #tpu.memory_space<vmem>>, %arg3: memref<32x64xbf16, #tpu.memory_space<vmem>>, %arg4: memref<1x64xf32, #tpu.memory_space<vmem>>, %arg5: memref<64x32xbf16, #tpu.memory_space<vmem>>, %arg6: memref<1x32xf32, #tpu.memory_space<vmem>>, %arg7: memref<1x32xf32, #tpu.memory_space<vmem>>, %arg8: memref<1x32xf32, #tpu.memory_space<vmem>>, %arg9: memref<8x32xf32, #tpu.memory_space<vmem>>, %arg10: memref<8x32xf32, #tpu.memory_space<vmem>>) attributes {dimension_semantics = [#tpu.dimension_semantics<parallel>, #tpu.dimension_semantics<arbitrary>], iteration_bounds = array<i64: 2, 1>, scalar_prefetch = 0 : i64, scratch_operands = 1 : i64, tpu.core_type = #tpu.core_type<tc>, window_params = [{transform_indices = @transform_0, window_bounds = array<i64: 8, 32>}, {transform_indices = @transform_1, window_bounds = array<i64: 32, 64>}, {transform_indices = @transform_2, window_bounds = array<i64: 1, 64>}, {transform_indices = @transform_3, window_bounds = array<i64: 64, 32>}, {pipeline_mode = #tpu.pipeline_mode<synchronous>, transform_indices = @transform_4, window_bounds = array<i64: 1, 32>}, {pipeline_mode = #tpu.pipeline_mode<synchronous>, transform_indices = @transform_5, window_bounds = array<i64: 1, 32>}, {pipeline_mode = #tpu.pipeline_mode<synchronous>, transform_indices = @transform_6, window_bounds = array<i64: 1, 32>}, {transform_indices = @transform_7, window_bounds = array<i64: 8, 32>}]} {
    %c0_i32 = arith.constant 0 : i32
    %0 = arith.cmpi eq, %arg1, %c0_i32 : i32
    %1 = arith.extui %0 : i1 to i32
    %c0_i32_0 = arith.constant 0 : i32
    %2 = arith.cmpi ne, %1, %c0_i32_0 : i32
    scf.if %2 {
      %cst_16 = arith.constant 0.000000e+00 : f32
      %21 = vector.broadcast %cst_16 : f32 to vector<8x32xf32>
      %c0_17 = arith.constant 0 : index
      %c0_18 = arith.constant 0 : index
      %22 = vector.load %arg10[%c0_17, %c0_18] : memref<8x32xf32, #tpu.memory_space<vmem>>, vector<8x32xf32>
      tpu.vector_store %arg10[%c0_17, %c0_18], %21 {strides = array<i32>} : memref<8x32xf32, #tpu.memory_space<vmem>>, vector<8x32xf32>,
    } else {
    }
    %c0 = arith.constant 0 : index
    %c0_1 = arith.constant 0 : index
    %3 = vector.load %arg2[%c0, %c0_1] : memref<8x32xf32, #tpu.memory_space<vmem>>, vector<8x32xf32>
    %4 = arith.truncf %3 : vector<8x32xf32> to vector<8x32xbf16>
    %c0_2 = arith.constant 0 : index
    %c0_3 = arith.constant 0 : index
    %5 = vector.load %arg3[%c0_2, %c0_3] : memref<32x64xbf16, #tpu.memory_space<vmem>>, vector<32x64xbf16>
    %cst = arith.constant dense<0.000000e+00> : vector<8x64xf32>
    %6 = tpu.matmul %4, %5, %cst {dimension_numbers = #tpu.dot_dimension_numbers<[1], [0], [0], [1], [0, 0, 1, 1], [], []>} : vector<8x32xbf16>, vector<32x64xbf16>, vector<8x64xf32> -> vector<8x64xf32>
    %c0_4 = arith.constant 0 : index
    %c0_5 = arith.constant 0 : index
    %7 = vector.load %arg4[%c0_4, %c0_5] : memref<1x64xf32, #tpu.memory_space<vmem>>, vector<1x64xf32>
    %8 = vector.broadcast %7 : vector<1x64xf32> to vector<8x64xf32>
    %9 = arith.addf %6, %8 : vector<8x64xf32>
    %cst_6 = arith.constant 0.000000e+00 : f32
    %10 = vector.broadcast %cst_6 : f32 to vector<8x64xf32>
    %11 = arith.maximumf %9, %10 : vector<8x64xf32>
    %c0_7 = arith.constant 0 : index
    %c0_8 = arith.constant 0 : index
    %12 = vector.load %arg10[%c0_7, %c0_8] : memref<8x32xf32, #tpu.memory_space<vmem>>, vector<8x32xf32>
    %13 = arith.truncf %11 : vector<8x64xf32> to vector<8x64xbf16>
    %c0_9 = arith.constant 0 : index
    %c0_10 = arith.constant 0 : index
    %14 = vector.load %arg5[%c0_9, %c0_10] : memref<64x32xbf16, #tpu.memory_space<vmem>>, vector<64x32xbf16>
    %cst_11 = arith.constant dense<0.000000e+00> : vector<8x32xf32>
    %15 = tpu.matmul %13, %14, %cst_11 {dimension_numbers = #tpu.dot_dimension_numbers<[1], [0], [0], [1], [0, 0, 1, 1], [], []>} : vector<8x64xbf16>, vector<64x32xbf16>, vector<8x32xf32> -> vector<8x32xf32>
    %16 = arith.addf %12, %15 : vector<8x32xf32>
    %c0_12 = arith.constant 0 : index
    %c0_13 = arith.constant 0 : index
    %17 = vector.load %arg10[%c0_12, %c0_13] : memref<8x32xf32, #tpu.memory_space<vmem>>, vector<8x32xf32>
    tpu.vector_store %arg10[%c0_12, %c0_13], %16 {strides = array<i32>} : memref<8x32xf32, #tpu.memory_space<vmem>>, vector<8x32xf32>,
    %c0_i32_14 = arith.constant 0 : i32
    %18 = arith.cmpi eq, %arg1, %c0_i32_14 : i32
    %19 = arith.extui %18 : i1 to i32
    %c0_i32_15 = arith.constant 0 : i32
    %20 = arith.cmpi ne, %19, %c0_i32_15 : i32
    scf.if %20 {
      %c0_16 = arith.constant 0 : index
      %c0_17 = arith.constant 0 : index
      %21 = vector.load %arg10[%c0_16, %c0_17] : memref<8x32xf32, #tpu.memory_space<vmem>>, vector<8x32xf32>
      %c0_18 = arith.constant 0 : index
      %c0_19 = arith.constant 0 : index
      %22 = vector.load %arg6[%c0_18, %c0_19] : memref<1x32xf32, #tpu.memory_space<vmem>>, vector<1x32xf32>
      %23 = vector.broadcast %22 : vector<1x32xf32> to vector<8x32xf32>
      %24 = arith.addf %21, %23 : vector<8x32xf32>
      %c0_20 = arith.constant 0 : index
      %c0_21 = arith.constant 0 : index
      %25 = vector.load %arg2[%c0_20, %c0_21] : memref<8x32xf32, #tpu.memory_space<vmem>>, vector<8x32xf32>
      %26 = arith.addf %24, %25 : vector<8x32xf32>
      %cst_22 = arith.constant dense<0.000000e+00> : vector<8xf32>
      %27 = vector.multi_reduction <add>, %26, %cst_22 [1] : vector<8x32xf32> to vector<8xf32>
      %28 = vector.shape_cast %27 : vector<8xf32> to vector<8x1xf32>
      %cst_23 = arith.constant 3.200000e+01 : f32
      %29 = vector.broadcast %cst_23 : f32 to vector<8x1xf32>
      %30 = arith.divf %28, %29 : vector<8x1xf32>
      %31 = vector.broadcast %30 : vector<8x1xf32> to vector<8x32xf32>
      %32 = arith.subf %26, %31 : vector<8x32xf32>
      %33 = arith.mulf %32, %32 : vector<8x32xf32>
      %cst_24 = arith.constant dense<0.000000e+00> : vector<8xf32>
      %34 = vector.multi_reduction <add>, %33, %cst_24 [1] : vector<8x32xf32> to vector<8xf32>
      %35 = vector.shape_cast %34 : vector<8xf32> to vector<8x1xf32>
      %cst_25 = arith.constant 3.200000e+01 : f32
      %36 = vector.broadcast %cst_25 : f32 to vector<8x1xf32>
      %37 = arith.divf %35, %36 : vector<8x1xf32>
      %38 = vector.broadcast %30 : vector<8x1xf32> to vector<8x32xf32>
      %39 = arith.subf %26, %38 : vector<8x32xf32>
      %cst_26 = arith.constant 9.99999974E-6 : f32
      %40 = vector.broadcast %cst_26 : f32 to vector<8x1xf32>
      %41 = arith.addf %37, %40 : vector<8x1xf32>
      %42 = math.rsqrt %41 : vector<8x1xf32>
      %43 = vector.broadcast %42 : vector<8x1xf32> to vector<8x32xf32>
      %44 = arith.mulf %39, %43 : vector<8x32xf32>
      %c0_27 = arith.constant 0 : index
      %c0_28 = arith.constant 0 : index
      %45 = vector.load %arg7[%c0_27, %c0_28] : memref<1x32xf32, #tpu.memory_space<vmem>>, vector<1x32xf32>
      %46 = vector.broadcast %45 : vector<1x32xf32> to vector<8x32xf32>
      %47 = arith.mulf %44, %46 : vector<8x32xf32>
      %c0_29 = arith.constant 0 : index
      %c0_30 = arith.constant 0 : index
      %48 = vector.load %arg8[%c0_29, %c0_30] : memref<1x32xf32, #tpu.memory_space<vmem>>, vector<1x32xf32>
      %49 = vector.broadcast %48 : vector<1x32xf32> to vector<8x32xf32>
      %50 = arith.addf %47, %49 : vector<8x32xf32>
      %c0_31 = arith.constant 0 : index
      %c0_32 = arith.constant 0 : index
      %51 = vector.load %arg9[%c0_31, %c0_32] : memref<8x32xf32, #tpu.memory_space<vmem>>, vector<8x32xf32>
      tpu.vector_store %arg9[%c0_31, %c0_32], %50 {strides = array<i32>} : memref<8x32xf32, #tpu.memory_space<vmem>>, vector<8x32xf32>,
    } else {
    }
    return
  }
  func.func @transform_0(%arg0: i32, %arg1: i32) -> (i32, i32) {
    %c0_i32 = arith.constant 0 : i32
    %c0_i32_0 = arith.constant 0 : i32
    return %arg0, %c0_i32 : i32, i32
  }
  func.func @transform_1(%arg0: i32, %arg1: i32) -> (i32, i32) {
    %c0_i32 = arith.constant 0 : i32
    %c0_i32_0 = arith.constant 0 : i32
    return %c0_i32, %arg1 : i32, i32
  }
  func.func @transform_2(%arg0: i32, %arg1: i32) -> (i32, i32) {
    %c0_i32 = arith.constant 0 : i32
    %c0_i32_0 = arith.constant 0 : i32
    return %c0_i32, %arg1 : i32, i32
  }
  func.func @transform_3(%arg0: i32, %arg1: i32) -> (i32, i32) {
    %c0_i32 = arith.constant 0 : i32
    %c0_i32_0 = arith.constant 0 : i32
    return %arg1, %c0_i32 : i32, i32
  }
  func.func @transform_4(%arg0: i32, %arg1: i32) -> (i32, i32) {
    %c0_i32 = arith.constant 0 : i32
    %c0_i32_0 = arith.constant 0 : i32
    %c0_i32_1 = arith.constant 0 : i32
    return %c0_i32, %c0_i32_0 : i32, i32
  }
  func.func @transform_5(%arg0: i32, %arg1: i32) -> (i32, i32) {
    %c0_i32 = arith.constant 0 : i32
    %c0_i32_0 = arith.constant 0 : i32
    %c0_i32_1 = arith.constant 0 : i32
    return %c0_i32, %c0_i32_0 : i32, i32
  }
  func.func @transform_6(%arg0: i32, %arg1: i32) -> (i32, i32) {
    %c0_i32 = arith.constant 0 : i32
    %c0_i32_0 = arith.constant 0 : i32
    %c0_i32_1 = arith.constant 0 : i32
    return %c0_i32, %c0_i32_0 : i32, i32
  }
  func.func @transform_7(%arg0: i32, %arg1: i32) -> (i32, i32) {
    %c0_i32 = arith.constant 0 : i32
    %c0_i32_0 = arith.constant 0 : i32
    return %arg0, %c0_i32 : i32, i32
  }
}

module attributes {stable_mosaic.version = 11 : i64} {
  func.func @_linear_nk_kernel(%arg0: i32, %arg1: i32, %arg2: i32, %arg3: memref<8x32xf32, #tpu.memory_space<vmem>>, %arg4: memref<32x50xbf16, #tpu.memory_space<vmem>>, %arg5: memref<1x50xf32, #tpu.memory_space<vmem>>, %arg6: memref<8x50xf32, #tpu.memory_space<vmem>>, %arg7: memref<8x50xf32, #tpu.memory_space<vmem>>) attributes {dimension_semantics = [#tpu.dimension_semantics<parallel>, #tpu.dimension_semantics<parallel>, #tpu.dimension_semantics<arbitrary>], iteration_bounds = array<i64: 2, 1, 1>, scalar_prefetch = 0 : i64, scratch_operands = 1 : i64, tpu.core_type = #tpu.core_type<tc>, window_params = [{transform_indices = @transform_0, window_bounds = array<i64: 8, 32>}, {transform_indices = @transform_1, window_bounds = array<i64: 32, 50>}, {transform_indices = @transform_2, window_bounds = array<i64: 1, 50>}, {transform_indices = @transform_3, window_bounds = array<i64: 8, 50>}]} {
    %c0_i32 = arith.constant 0 : i32
    %0 = arith.cmpi eq, %arg2, %c0_i32 : i32
    %1 = arith.extui %0 : i1 to i32
    %c0_i32_0 = arith.constant 0 : i32
    %2 = arith.cmpi ne, %1, %c0_i32_0 : i32
    scf.if %2 {
      %cst_10 = arith.constant 0.000000e+00 : f32
      %13 = vector.broadcast %cst_10 : f32 to vector<8x50xf32>
      %c0_11 = arith.constant 0 : index
      %c0_12 = arith.constant 0 : index
      %14 = vector.load %arg7[%c0_11, %c0_12] : memref<8x50xf32, #tpu.memory_space<vmem>>, vector<8x50xf32>
      tpu.vector_store %arg7[%c0_11, %c0_12], %13 {strides = array<i32>} : memref<8x50xf32, #tpu.memory_space<vmem>>, vector<8x50xf32>,
    } else {
    }
    %c0 = arith.constant 0 : index
    %c0_1 = arith.constant 0 : index
    %3 = vector.load %arg7[%c0, %c0_1] : memref<8x50xf32, #tpu.memory_space<vmem>>, vector<8x50xf32>
    %c0_2 = arith.constant 0 : index
    %c0_3 = arith.constant 0 : index
    %4 = vector.load %arg3[%c0_2, %c0_3] : memref<8x32xf32, #tpu.memory_space<vmem>>, vector<8x32xf32>
    %5 = arith.truncf %4 : vector<8x32xf32> to vector<8x32xbf16>
    %c0_4 = arith.constant 0 : index
    %c0_5 = arith.constant 0 : index
    %6 = vector.load %arg4[%c0_4, %c0_5] : memref<32x50xbf16, #tpu.memory_space<vmem>>, vector<32x50xbf16>
    %cst = arith.constant dense<0.000000e+00> : vector<8x50xf32>
    %7 = tpu.matmul %5, %6, %cst {dimension_numbers = #tpu.dot_dimension_numbers<[1], [0], [0], [1], [0, 0, 1, 1], [], []>} : vector<8x32xbf16>, vector<32x50xbf16>, vector<8x50xf32> -> vector<8x50xf32>
    %8 = arith.addf %3, %7 : vector<8x50xf32>
    %c0_6 = arith.constant 0 : index
    %c0_7 = arith.constant 0 : index
    %9 = vector.load %arg7[%c0_6, %c0_7] : memref<8x50xf32, #tpu.memory_space<vmem>>, vector<8x50xf32>
    tpu.vector_store %arg7[%c0_6, %c0_7], %8 {strides = array<i32>} : memref<8x50xf32, #tpu.memory_space<vmem>>, vector<8x50xf32>,
    %c0_i32_8 = arith.constant 0 : i32
    %10 = arith.cmpi eq, %arg2, %c0_i32_8 : i32
    %11 = arith.extui %10 : i1 to i32
    %c0_i32_9 = arith.constant 0 : i32
    %12 = arith.cmpi ne, %11, %c0_i32_9 : i32
    scf.if %12 {
      %c0_10 = arith.constant 0 : index
      %c0_11 = arith.constant 0 : index
      %13 = vector.load %arg7[%c0_10, %c0_11] : memref<8x50xf32, #tpu.memory_space<vmem>>, vector<8x50xf32>
      %c0_12 = arith.constant 0 : index
      %c0_13 = arith.constant 0 : index
      %14 = vector.load %arg5[%c0_12, %c0_13] : memref<1x50xf32, #tpu.memory_space<vmem>>, vector<1x50xf32>
      %15 = vector.broadcast %14 : vector<1x50xf32> to vector<8x50xf32>
      %16 = arith.addf %13, %15 : vector<8x50xf32>
      %c0_14 = arith.constant 0 : index
      %c0_15 = arith.constant 0 : index
      %17 = vector.load %arg6[%c0_14, %c0_15] : memref<8x50xf32, #tpu.memory_space<vmem>>, vector<8x50xf32>
      tpu.vector_store %arg6[%c0_14, %c0_15], %16 {strides = array<i32>} : memref<8x50xf32, #tpu.memory_space<vmem>>, vector<8x50xf32>,
    } else {
    }
    return
  }
  func.func @transform_0(%arg0: i32, %arg1: i32, %arg2: i32) -> (i32, i32) {
    %c0_i32 = arith.constant 0 : i32
    return %arg0, %arg2 : i32, i32
  }
  func.func @transform_1(%arg0: i32, %arg1: i32, %arg2: i32) -> (i32, i32) {
    %c0_i32 = arith.constant 0 : i32
    return %arg2, %arg1 : i32, i32
  }
  func.func @transform_2(%arg0: i32, %arg1: i32, %arg2: i32) -> (i32, i32) {
    %c0_i32 = arith.constant 0 : i32
    %c0_i32_0 = arith.constant 0 : i32
    return %c0_i32, %arg1 : i32, i32
  }
  func.func @transform_3(%arg0: i32, %arg1: i32, %arg2: i32) -> (i32, i32) {
    %c0_i32 = arith.constant 0 : i32
    return %arg0, %arg1 : i32, i32
  }
}

</mosaic_0001>

<bundles_post_ra>
// kernel: decoder_forward.17
= control target key start
LH: loop header
LB: loop body
LE: loop exit
PB: predicated region body
PF: predicated region fallthrough
CT: control target
= control target key end

     0   :  { %s644_s18 = smov 0   ;;  %s646_s19 = smov 0   ;;  %s694_s0 = inlined_call_operand.vmem [shape: f32[16,32], index: 0, kind: input, shape index: {}]   ;;  %s695_s1 = inlined_call_operand.vmem [shape: bf16[32,96], index: 1, kind: input, shape index: {}]   ;;  %s696_s2 = inlined_call_operand.vmem [shape: f32[1,96], index: 2, kind: input, shape index: {}]   ;;  %s697_s3 = inlined_call_operand.vmem [shape: bf16[16,32], index: 3, kind: output, shape index: {0}]   ;;  %s698_s4 = inlined_call_operand.vmem [shape: bf16[16,32], index: 4, kind: output, shape index: {1}]   ;;  %s699_s5 = inlined_call_operand.vmem [shape: bf16[16,32], index: 5, kind: output, shape index: {2}]  }
   0x1   :  { %s648_s20 = smov 0  }
   0x2 LB: > { %s28_s21 = sadd.s32 1, %s604_s19  ;;  %p532_p0 = scmp.ge.s32.totalorder %s608_s20, 1  ;;  %s608_s20 = sphi %s648_s20, %s16_s20   ;;  %s604_s19 = sphi %s646_s19, %s701_s19   ;;  %s600_s18 = sphi %s644_s18, %s700_s18  }
   0x3   : > { %p30_p1 = scmp.ge.s32.totalorder %s28_s21, 2  ;;  %p219_p2 = scmp.lt.s32.totalorder %s608_s20, 3 }
   0x5   : > { %s703_s21 = smov (%p30_p1, %s28_s21), 0  ;;  %p220_p3 = pnand %p532_p0, %p219_p2 }
   0x6   : > { %vm291_vm0 = vcmask (!%p220_p3), 785408   ;;  %v610_v0 = vmov (!%p220_p3), 0.0   ;;  %v584_v1 = vld [vmem:[%s695_s1] sm:$0xff] (!%p220_p3)   ;;  %vm611_vm1 = vmmov (!%p220_p3), 0   ;;  %p261_p4 = scmp.lt.s32.totalorder (!%p220_p3), %s600_s18, 1  ;;  %v585_v2 = vld [vmem:[%s695_s1 + $0x8] sm:$0xff] (!%p220_p3)  }
   0x7   : > { %223 = sbr.rel (%p220_p3) target bundleno = 366 (0x16e), region = 32  ;;  %292 = vst.msk [vmem:[#allocation2] sm:$0xff] (!%p220_p3), %vm291_vm0, %v610_v0  ;;  %548 = vmatprep.subr.bf16.mxu0 (!%p220_p3), %v610_v0  ;;  %552 = vmatprep.mubr.msk.bf16.mxu0 (!%p220_p3), %vm611_vm1, %v610_v0  ;;  %vm312_vm2 = vcmask (!%p220_p3), 261120   ;;  %v540_v11 = vld [vmem:[%s696_s2] ss:$0 sm:$0xff] (!%p220_p3)  ;;  %vm372_vm3 = vcmask (!%p220_p3), 257024  }
   0x8   : > { %549 = vmatpush3.bf16.msra.mxu0 (!%p220_p3), %v584_v1  ;;  %s612_s11 = smov (!%p220_p3), 96   ;;  %s613_s12 = smov (!%p220_p3), 64  }
   0x9   : > { %550 = vmatprep.subr.bf16.mxu0 (!%p220_p3), %v610_v0 }
   0xc   : > { %551 = vmatpush3.bf16.msra.mxu0 (!%p220_p3), %v585_v2 }
   0xe   : > { %s705_s18 = smov (!%p261_p4, %s600_s18), 1  ;;  %v293_v5 = vld [vmem:[#allocation2] sm:$0xff] }
   0xf   : > { %s533_s26 = sshll.u32 %s705_s18, 3  ;;  %s534_s7 = sshll.u32 %s705_s18, 2 }
  0x10   : > { %s267_s29 = scalar_lea.vmem %s694_s0, %s533_s26  ;;  %s277_s10 = scalar_lea.vmem %s697_s3, %s534_s7 }
  0x11   : > { %v294_v3 = vld [vmem:[%s267_s29] sm:$0xff]  ;;  %s281_s15 = scalar_lea.vmem %s698_s4, %s534_s7  ;;  %s285_s18 = scalar_lea.vmem %s699_s5, %s534_s7 }
  0x12   : > { %v295_v4 = vpack.c.bf16 %v294_v3, %v294_v3 }
  0x14   : > { %553 = vmatmul.mubr.msk.bf16.vlgmr.msra.gmra.mrb[0].mxu0 %vm312_vm2, %v295_v4 }
  0xe7   : > { %v350_v6 = vpop.f32.mrb[0].mxu0 }
  0xe8   : > { %v356_v7 = vadd.f32 %v350_v6, %v293_v5  ;;  %v554_v8 = vpop.f32.mrb[1].mxu0 }
  0xe9   : > { %v353_v9 = vpop.f32.mrb[2].mxu0 }
  0xea   : > { %358 = vst.msk [vmem:[#allocation2] sm:$0xff] %vm291_vm0, %v356_v7  ;;  %v555_v10 = vpop.f32.mrb[3].mxu0 }
  0xf1   : > { %v362_v12 = vld [vmem:[#allocation2] sm:$0xff] }
  0xf2   : > { %v370_v13 = vadd.f32 %v540_v11, %v362_v12 }
  0xf4   : > { %v371_v14 = vpack.c.bf16 %v370_v13, %v370_v13 }
  0xf6   : > { %377 = vrot.lane.b32.xlu0 %v371_v14, %s612_s11  ;;  %373 = vst.msk [vmem:[%s277_s10] sm:$0xf] %vm372_vm3, %v371_v14 }
  0xfa   : > { %381 = vrot.lane.b32.xlu0 %v371_v14, %s613_s12 }
 0x168   : > { %v378_v15 = vpop.permute.xlu0 %377 }
 0x169   : > { %380 = vst.msk [vmem:[%s281_s15] sm:$0xf] %vm372_vm3, %v378_v15 }
 0x16c   : > { %v382_v16 = vpop.permute.xlu0 %381 }
 0x16d   : > { %384 = vst.msk [vmem:[%s285_s18] sm:$0xf] %vm372_vm3, %v382_v16 }
 0x16e PF: > { %s16_s20 = sadd.s32 1, %s608_s20   ;;  %s700_s18 = smov %s604_s19 }
 0x16f   : > { %p13_p5 = scmp.ge.s32.totalorder %s16_s20, 4   ;;  %s701_s19 = smov %s703_s21 }
 0x171   :  { %15 = sbr.rel (!%p13_p5) target bundleno = 2 (0x2), region = 97 }

// kernel: decoder_forward.20
= control target key start
LH: loop header
LB: loop body
LE: loop exit
PB: predicated region body
PF: predicated region fallthrough
CT: control target
= control target key end

     0   :  { %s546_s12 = smov 0   ;;  %s548_s13 = smov 0   ;;  %s588_s0 = inlined_call_operand.vmem [shape: f32[16,32], index: 0, kind: input, shape index: {}]   ;;  %s589_s1 = inlined_call_operand.vmem [shape: bf16[32,32], index: 1, kind: input, shape index: {}]   ;;  %s590_s2 = inlined_call_operand.vmem [shape: f32[1,32], index: 2, kind: input, shape index: {}]   ;;  %s591_s3 = inlined_call_operand.vmem [shape: bf16[16,32], index: 3, kind: output, shape index: {}]  }
   0x1   :  { %s550_s14 = smov 0  }
   0x2 LB: > { %s32_s15 = sadd.s32 1, %s518_s13  ;;  %p452_p0 = scmp.ge.s32.totalorder %s522_s14, 1  ;;  %s522_s14 = sphi %s550_s14, %s13_s14   ;;  %s518_s13 = sphi %s548_s13, %s593_s13   ;;  %s514_s12 = sphi %s546_s12, %s592_s12  }
   0x3   : > { %p34_p1 = scmp.ge.s32.totalorder %s32_s15, 2  ;;  %p186_p2 = scmp.lt.s32.totalorder %s522_s14, 3 }
   0x5   : > { %s595_s15 = smov (%p34_p1, %s32_s15), 0  ;;  %p187_p3 = pnand %p452_p0, %p186_p2 }
   0x6   : > { %v498_v0 = vld [vmem:[%s589_s1] sm:$0xff] (!%p187_p3)   ;;  %v524_v1 = vmov (!%p187_p3), 0.0   ;;  %v499_v2 = vld [vmem:[%s589_s1 + $0x8] sm:$0xff] (!%p187_p3)   ;;  %vm525_vm0 = vmmov (!%p187_p3), 0   ;;  %p225_p4 = scmp.lt.s32.totalorder (!%p187_p3), %s514_s12, 1  ;;  %vm256_vm1 = vcmask (!%p187_p3), 261120  }
   0x7   : > { %190 = sbr.rel (%p187_p3) target bundleno = 247 (0xf7), region = 32  ;;  %464 = vmatprep.subr.bf16.mxu0 (!%p187_p3), %v524_v1  ;;  %468 = vmatprep.mubr.msk.bf16.mxu0 (!%p187_p3), %vm525_vm0, %v524_v1  ;;  %257 = vst.msk [vmem:[#allocation2] sm:$0xff] (!%p187_p3), %vm256_vm1, %v524_v1  ;;  %v458_v11 = vld [vmem:[%s590_s2] ss:$0 sm:$0xff] (!%p187_p3)  ;;  %vm336_vm2 = vcmask (!%p187_p3), 257024  }
   0x8   : > { %465 = vmatpush3.bf16.msra.mxu0 (!%p187_p3), %v498_v0 }
   0x9   : > { %466 = vmatprep.subr.bf16.mxu0 (!%p187_p3), %v524_v1 }
   0xc   : > { %467 = vmatpush3.bf16.msra.mxu0 (!%p187_p3), %v499_v2 }
   0xe   : > { %s597_s12 = smov (!%p225_p4, %s514_s12), 1  ;;  %v258_v5 = vld [vmem:[#allocation2] sm:$0xff] }
   0xf   : > { %s453_s20 = sshll.u32 %s597_s12, 3  ;;  %s454_s26 = sshll.u32 %s597_s12, 2 }
  0x10   : > { %s231_s23 = scalar_lea.vmem %s588_s0, %s453_s20  ;;  %s250_s29 = scalar_lea.vmem %s591_s3, %s454_s26 }
  0x11   : > { %v259_v3 = vld [vmem:[%s231_s23] sm:$0xff] }
  0x12   : > { %v260_v4 = vpack.c.bf16 %v259_v3, %v259_v3 }
  0x14   : > { %469 = vmatmul.mubr.msk.bf16.vlgmr.msra.gmra.mrb[0].mxu0 %vm256_vm1, %v260_v4 }
  0xe7   : > { %v315_v6 = vpop.f32.mrb[0].mxu0 }
  0xe8   : > { %v321_v7 = vadd.f32 %v315_v6, %v258_v5  ;;  %v470_v8 = vpop.f32.mrb[1].mxu0 }
  0xe9   : > { %v318_v9 = vpop.f32.mrb[2].mxu0 }
  0xea   : > { %322 = vst.msk [vmem:[#allocation2] sm:$0xff] %vm256_vm1, %v321_v7  ;;  %v471_v10 = vpop.f32.mrb[3].mxu0 }
  0xf1   : > { %v326_v12 = vld [vmem:[#allocation2] sm:$0xff] }
  0xf2   : > { %v334_v13 = vadd.f32 %v458_v11, %v326_v12 }
  0xf4   : > { %v335_v14 = vpack.c.bf16 %v334_v13, %v334_v13 }
  0xf6   : > { %337 = vst.msk [vmem:[%s250_s29] sm:$0xf] %vm336_vm2, %v335_v14 }
  0xf7 PF: > { %s13_s14 = sadd.s32 1, %s522_s14   ;;  %s592_s12 = smov %s518_s13 }
  0xf8   : > { %p10_p5 = scmp.ge.s32.totalorder %s13_s14, 4   ;;  %s593_s13 = smov %s595_s15 }
  0xfa   :  { %12 = sbr.rel (!%p10_p5) target bundleno = 2 (0x2), region = 76 }

// kernel: decoder_forward.19
= control target key start
LH: loop header
LB: loop body
LE: loop exit
PB: predicated region body
PF: predicated region fallthrough
CT: control target
= control target key end

     0   :  { %s636_s21 = smov 0   ;;  %s638_s22 = smov 0   ;;  %s697_s0 = inlined_call_operand.vmem [shape: bf16[16,32], index: 0, kind: input, shape index: {}]   ;;  %s698_s1 = inlined_call_operand.vmem [shape: bf16[32,32], index: 1, kind: input, shape index: {}]   ;;  %s699_s2 = inlined_call_operand.vmem [shape: f32[1,32], index: 2, kind: input, shape index: {}]   ;;  %s700_s3 = inlined_call_operand.vmem [shape: f32[16,32], index: 3, kind: input, shape index: {}]   ;;  %s701_s4 = inlined_call_operand.vmem [shape: f32[1,32], index: 4, kind: input, shape index: {}]   ;;  %s702_s5 = inlined_call_operand.vmem [shape: f32[1,32], index: 5, kind: input, shape index: {}]   ;;  %s703_s6 = inlined_call_operand.vmem [shape: f32[16,32], index: 6, kind: output, shape index: {}]  }
   0x1   :  { %s640_s23 = smov 0  }
   0x2 LB: > { %s28_s24 = sadd.s32 1, %s593_s22  ;;  %p522_p0 = scmp.ge.s32.totalorder %s597_s23, 1  ;;  %s597_s23 = sphi %s640_s23, %s16_s23   ;;  %s593_s22 = sphi %s638_s22, %s705_s22   ;;  %s589_s21 = sphi %s636_s21, %s704_s21  }
   0x3   : > { %p30_p1 = scmp.ge.s32.totalorder %s28_s24, 2  ;;  %p248_p2 = scmp.lt.s32.totalorder %s597_s23, 3 }
   0x5   : > { %s707_s24 = smov (%p30_p1, %s28_s24), 0  ;;  %p249_p3 = pnand %p522_p0, %p248_p2 }
   0x6   : > { %vm314_vm0 = vcmask (!%p249_p3), 261120   ;;  %v599_v0 = vmov (!%p249_p3), 0.0   ;;  %v571_v1 = vld [vmem:[%s698_s1] sm:$0xff] (!%p249_p3)   ;;  %vm600_vm1 = vmmov (!%p249_p3), 0   ;;  %p288_p4 = scmp.lt.s32.totalorder (!%p249_p3), %s589_s21, 1  ;;  %v572_v2 = vld [vmem:[%s698_s1 + $0x8] sm:$0xff] (!%p249_p3)  }
   0x7   : > { %252 = sbr.rel (%p249_p3) target bundleno = 558 (0x22e), region = 44  ;;  %315 = vst.msk [vmem:[#allocation2] sm:$0xff] (!%p249_p3), %vm314_vm0, %v599_v0  ;;  %537 = vmatprep.subr.bf16.mxu0 (!%p249_p3), %v599_v0  ;;  %541 = vmatprep.mubr.msk.bf16.mxu0 (!%p249_p3), %vm600_vm1, %v599_v0  ;;  %v529_v10 = vld [vmem:[%s699_s2] ss:$0 sm:$0xff] (!%p249_p3) }
   0x8   : > { %538 = vmatpush3.bf16.msra.mxu0 (!%p249_p3), %v571_v1  ;;  %v530_v25 = vld [vmem:[%s701_s4] ss:$0 sm:$0xff] (!%p249_p3) }
   0x9   : > { %539 = vmatprep.subr.bf16.mxu0 (!%p249_p3), %v599_v0  ;;  %v531_v27 = vld [vmem:[%s702_s5] ss:$0 sm:$0xff] (!%p249_p3) }
   0xc   : > { %540 = vmatpush3.bf16.msra.mxu0 (!%p249_p3), %v572_v2 }
   0xe   : > { %s709_s21 = smov (!%p288_p4, %s589_s21), 1  ;;  %v316_v4 = vld [vmem:[#allocation2] sm:$0xff] }
   0xf   : > { %s523_s29 = sshll.u32 %s709_s21, 2  ;;  %s524_s9 = sshll.u32 %s709_s21, 3 }
  0x10   : > { %s294_s8 = scalar_lea.vmem %s697_s0, %s523_s29  ;;  %s304_s12 = scalar_lea.vmem %s700_s3, %s524_s9 }
  0x11   : > { %v317_v3 = vld [vmem:[%s294_s8] sm:$0xf]  ;;  %s308_s21 = scalar_lea.vmem %s703_s6, %s524_s9 }
  0x12   : > { %542 = vmatmul.mubr.msk.bf16.vlgmr.msra.gmra.mrb[0].mxu0 %vm314_vm0, %v317_v3  ;;  %v392_v12 = vld [vmem:[%s304_s12] sm:$0xff] }
  0xe5   : > { %v372_v5 = vpop.f32.mrb[0].mxu0 }
  0xe6   : > { %v378_v6 = vadd.f32 %v372_v5, %v316_v4  ;;  %v543_v7 = vpop.f32.mrb[1].mxu0 }
  0xe7   : > { %v375_v8 = vpop.f32.mrb[2].mxu0 }
  0xe8   : > { %379 = vst.msk [vmem:[#allocation2] sm:$0xff] %vm314_vm0, %v378_v6  ;;  %v544_v9 = vpop.f32.mrb[3].mxu0 }
  0xef   : > { %v383_v11 = vld [vmem:[#allocation2] sm:$0xff] }
  0xf0   : > { %v391_v13 = vadd.f32 %v529_v10, %v383_v11 }
  0xf2   : > { %v393_v14 = vadd.f32 %v392_v12, %v391_v13 }
  0xf4   : > { %v394_v15 = vsel %vm314_vm0, %v393_v14, 0.0 }
  0xf5   : > { %395 = vadd.xlane.f32.xlu0 %v394_v15 }
 0x182   : > { %v396_v16 = vpop.xlane.xlu0 %395 }
 0x183   : > { %v398_v17 = vmul.f32 0.03125, %v396_v16 }
 0x185   : > { %v399_v18 = vsub.f32 %v393_v14, %v398_v17 }
 0x187   : > { %v400_v19 = vmul.f32 %v399_v18, %v399_v18 }
 0x189   : > { %v401_v20 = vsel %vm314_vm0, %v400_v19, 0.0 }
 0x18a   : > { %402 = vadd.xlane.f32.xlu0 %v401_v20 }
 0x217   : > { %v403_v21 = vpop.xlane.xlu0 %402 }
 0x218   : > { %v404_v22 = vmul.f32 0.03125, %v403_v21 }
 0x21a   : > { %v405_v23 = vadd.f32 1e-05, %v404_v22 }
 0x21c   : > { %573 = vrsqrt.f32 %v405_v23 }
 0x226   : > { %v574_v24 = vpop.eup %573 }
 0x227   : > { %v407_v26 = vmul.f32 %v574_v24, %v399_v18 }
 0x229   : > { %v415_v28 = vmul.f32 %v530_v25, %v407_v26 }
 0x22b   : > { %v423_v29 = vadd.f32 %v531_v27, %v415_v28 }
 0x22d   : > { %424 = vst.msk [vmem:[%s308_s21] sm:$0xff] %vm314_vm0, %v423_v29 }
 0x22e PF: > { %s16_s23 = sadd.s32 1, %s597_s23   ;;  %s704_s21 = smov %s593_s22 }
 0x22f   : > { %p13_p5 = scmp.ge.s32.totalorder %s16_s23, 4   ;;  %s705_s22 = smov %s707_s24 }
 0x231   :  { %15 = sbr.rel (!%p13_p5) target bundleno = 2 (0x2), region = 88 }

// kernel: decoder_forward.18
= control target key start
LH: loop header
LB: loop body
LE: loop exit
PB: predicated region body
PF: predicated region fallthrough
CT: control target
= control target key end

     0   :  { %11 = vsyncpa [#allocation4], 0  ;;  %s1503_s0 = inlined_call_operand.vmem [shape: bf16[2,8,32], index: 0, kind: input, shape index: {}]   ;;  %s1504_s1 = inlined_call_operand.vmem [shape: bf16[2,8,32], index: 1, kind: input, shape index: {}]   ;;  %s1505_s2 = inlined_call_operand.vmem [shape: bf16[2,8,32], index: 2, kind: input, shape index: {}]   ;;  %s1506_s3 = inlined_call_operand.vmem [shape: bf16[2,8,8], index: 3, kind: input, shape index: {}]   ;;  %s1507_s4 = inlined_call_operand.vmem [shape: bf16[2,8,32], index: 4, kind: output, shape index: {0}]   ;;  %s1508_s5 = inlined_call_operand.hbm [shape: f32[2,4,8,8], index: 5, kind: output, shape index: {1}]  }
   0x1   :  { %13 = vsyncpa [#allocation4 + $0x1], 0  ;;  %s1283_s18 = smov 0   ;;  %s1285_s19 = smov 0  }
   0x2   :  { %s1287_s20 = smov 0   ;;  %s1289_s21 = smov 0  }
   0x3   :  { %s1291_s22 = smov 0   ;;  %s1293_s23 = smov 0  }
   0x4 LB: > { %s985_s24 = sadd.s32 4294967295, %s1241_s23   ;;  %s986_s25 = sadd.s32 4294967294, %s1241_s23   ;;  %s1241_s23 = sphi %s1293_s23, %s19_s23   ;;  %s1237_s22 = sphi %s1291_s22, %s1515_s22   ;;  %s1233_s21 = sphi %s1289_s21, %s1514_s21   ;;  %s1229_s20 = sphi %s1287_s20, %s1513_s20   ;;  %s1225_s19 = sphi %s1285_s19, %s1512_s19   ;;  %s1221_s18 = sphi %s1283_s18, %s1511_s18  }
   0x5   : > { %s31_s26 = sadd.s32 1, %s1237_s22  ;;  %s176_s27 = sadd.s32 1, %s1229_s20 }
   0x6   : > { %p33_p0 = scmp.ge.s32.totalorder %s31_s26, 2  ;;  %p186_p1 = scmp.ne.s32.totalorder %s1229_s20, %s1225_s19 }
   0x7   : > { %p187_p2 = scmp.eq.s32.totalorder %s985_s24, 1  ;;  %p192_p3 = scmp.ne.s32.totalorder %s1225_s19, %s1221_s18 }
   0x8   : > { %s1517_s26 = smov (%p33_p0, %s31_s26), 0  ;;  %p193_p5 = scmp.eq.s32.totalorder %s986_s25, 1 }
   0x9   : > { %p1323_p4 = por %p187_p2, %p186_p1  ;;  %s171_s29 = ssub.s32 %s1237_s22, %s1517_s26 }
   0xa   : > { %p989_p6 = scmp.ge.s32.totalorder %s1241_s23, 1  ;;  %p174_p7 = scmp.eq.s32.totalorder %s171_s29, 0 }
   0xb   : > { %p1330_p8 = por %p193_p5, %p192_p3  ;;  %p245_p9 = scmp.lt.s32.totalorder %s1241_s23, 3 }
   0xc   : > { %s1336_s6 = scalar_select %p174_p7, %s1229_s20, %s176_s27  }
   0xd   : > { %p246_p10 = pnand %p989_p6, %p245_p9 }
   0xe   : > { %p297_p11 = scmp.lt.s32.totalorder (!%p246_p10), %s1233_s21, 1  ;;  %v1243_v0 = vmov (!%p246_p10), 0.0   ;;  %vm1244_vm0 = vmmov (!%p246_p10), 0   ;;  %vm332_vm1 = vcmask (!%p246_p10), 64512   ;;  %s1245_s24 = smov (!%p246_p10), 120   ;;  %vm397_vm2 = vcmask (!%p246_p10), 1043456  }
   0xf   : > { %249 = sbr.rel (%p246_p10) target bundleno = 1498 (0x5da), region = 36  ;;  %1032 = vmatprep.subr.bf16.mxu0 (!%p246_p10), %v1243_v0  ;;  %1034 = vmatprep.mubr.msk.bf16.mxu0 (!%p246_p10), %vm1244_vm0, %v1243_v0  ;;  %s1246_s25 = smov (!%p246_p10), 112  }
  0x10   : > { %1038 = vmatprep.subr.bf16.mxu1 (!%p246_p10), %v1243_v0  ;;  %1040 = vmatprep.mubr.msk.bf16.mxu1 (!%p246_p10), %vm1244_vm0, %v1243_v0  ;;  %s1247_s27 = smov (!%p246_p10), 104   ;;  %s294_s10 = sand.u32 (!%p246_p10), 1, %s1225_s19  }
  0x11   : > { %s1248_s13 = smov (!%p246_p10), 8   ;;  %s1015_s15 = sshll.u32 (!%p246_p10), %s1233_s21, 9 }
  0x16   : > { %s298_s7 = scalar_select %p297_p11, %s1233_s21, 1 }
  0x17   : > { %s1250_s21 = smov [#allocation3]  }
  0x18   : > { %s1346_s8 = sshll.u32 %s298_s7, 2  ;;  %s1167_s7 = sshll.u32 %s1250_s21, 4  ;;  %s1168_s7 = int_to_ptr.vmem [resolvable:$false] %s1167_s7 }
  0x19   : > { %s307_s11 = scalar_lea.vmem %s1504_s1, %s1346_s8  ;;  %s303_s14 = scalar_lea.vmem %s1503_s0, %s1346_s8 }
  0x1a   : > { %v328_v1 = vld [vmem:[%s307_s11] sm:$0xf]  ;;  %s318_s17 = scalar_lea.vmem %s1506_s3, %s1346_s8  ;;  %s311_s9 = scalar_lea.vmem %s1505_s2, %s1346_s8 }
  0x1b   : > { %v337_v2 = vsel %vm332_vm1, %v328_v1, 0  ;;  %v327_v3 = vld [vmem:[%s303_s14] sm:$0xf]  ;;  %v999_v13 = vcombine.low %v328_v1, %v328_v1  ;;  %s990_s11 = sshll.u32 %s294_s10, 5  ;;  %s1249_s14 = smov 16  }
  0x1c   : > { %1033 = vmatpush3.bf16.xpose.msra.mxu0 %v337_v2  ;;  %v330_v4 = vld [vmem:[%s318_s17] sm:$0xf]  ;;  %v998_v14 = vcombine.low %v327_v3, %v327_v3  ;;  %s1389_s12 = scalar_lea.vmem [#allocation3], %s990_s11 }
  0x1d   : > { %1050 = vmatprep.subr.bf16.mxu0 %v1243_v0  ;;  %v1365_v5 = vunpack.c.l.bf16 %v330_v4  ;;  %450 = vrot.lane.b32.xlu1 %v999_v13, %s1245_s24  ;;  %v1379_v20 = vld [vmem:[%s311_s9] sm:$0xf]  ;;  %s840_s16 = sshll.u32 %s1389_s12, 4  ;;  %s1169_s9 = scalar_lea.vmem %s1168_s7, 1024  ;;  %s1448_s16 = int_to_ptr.vmem [resolvable:$true] %s840_s16 }
  0x1e   : > { %v399_v21 = vsel %vm397_vm2, %v1379_v20, 0  ;;  %s1163_s29 = scalar_lea.vmem %s1448_s16, 512  ;;  %p1170_p1 = scmp.lt.s32.totalorder %s1448_s16, %s1168_s7 }
  0x1f   : > { %1039 = vmatpush3.bf16.msra.mxu1 %v399_v21  ;;  %p1164_p12 = scmp.ne.s32.totalorder %s1448_s16, %s1163_s29  ;;  %p1171_p2 = scmp.lt.s32.totalorder %s1169_s9, %s1163_s29 }
  0x20   : > { %1044 = vmatprep.subr.bf16.mxu1 %v1243_v0 }
  0x21   : > { %445 = vrot.lane.b32.xlu1 %v998_v14, %s1245_s24  ;;  %p1165_p13 = pnand %p1164_p12, %p1323_p4  ;;  %p1172_p3 = por %p1171_p2, %p1170_p1 }
  0x23   : > { %1035 = vmatmul.mubr.msk.bf16.vlgmr.msra.gmra.mrb[0].mxu0 %vm332_vm1, %v327_v3  ;;  %p1166_p0 = pneg %p1165_p13 }
  0x24   : > { %1052 = vmatprep.mubr.msk.bf16.mxu0 %vm1244_vm0, %v1243_v0 }
  0x25   : > { %571 = vrot.lane.b32.xlu1 %v998_v14, %s1246_s25  ;;  %p1173_p5 = pnand %p1172_p3, %p1166_p0 }
  0x29   : > { %693 = vrot.lane.b32.xlu1 %v999_v13, %s1247_s27 }
  0x2d   : > { %691 = vrot.lane.b32.xlu1 %v998_v14, %s1247_s27 }
  0x8f   : > { %v451_v24 = vpop.permute.xlu1 %450 }
  0x90   : > { %v456_v26 = vsel %vm332_vm1, %v451_v24, 0 }
  0x93   : > { %v446_v28 = vpop.permute.xlu1 %445 }
  0x97   : > { %v572_v30 = vpop.permute.xlu1 %571 }
  0x9b   : > { %v694_v32 = vpop.permute.xlu1 %693 }
  0x9c   : > { %v699_v33 = vsel %vm332_vm1, %v694_v32, 0 }
  0x9f   : > { %v692_v34 = vpop.permute.xlu1 %691 }
  0xf6   : > { %v373_v6 = vpop.f32.mrb[0].mxu0 }
  0xf7   : > { %v379_v7 = vmul.f32 0.35355338, %v373_v6  ;;  %v1036_v8 = vpop.f32.mrb[1].mxu0 }
  0xf8   : > { %v376_v9 = vpop.f32.mrb[2].mxu0 }
  0xf9   : > { %v1037_v10 = vpop.f32.mrb[3].mxu0  ;;  %v380_v11 = vadd.f32 %v379_v7, %v1365_v5 }
  0xfb   : > { %v381_v12 = vsel %vm332_vm1, %v380_v11, -inf }
  0xfc   : > { %382 = vmax.xlane.f32.xlu0 %v381_v12 }
 0x189   : > { %v383_v15 = vpop.xlane.xlu0 %382 }
 0x18a   : > { %v384_v16 = vsub.f32 %v380_v11, %v383_v15 }
 0x18c   : > { %v385_v17 = vmul.f32 1.442695, %v384_v16 }
 0x18e   : > { %1147 = vpow2.f32 %v385_v17 }
 0x198   : > { %v1148_v18 = vpop.eup %1147 }
 0x199   : > { %v387_v19 = vsel %vm332_vm1, %v1148_v18, 0.0 }
 0x19a   : > { %388 = vadd.xlane.f32.xlu0 %v387_v19 }
 0x1b0   : > { %573 = vrot.lane.b32.xlu0 %v999_v13, %s1246_s25 }
 0x227   : > { %v389_v22 = vpop.xlane.xlu0 %388 }
 0x228   : > { %1149 = vrcp.f32 %v389_v22 }
 0x22b   : > { %v574_v29 = vpop.permute.xlu0 %573 }
 0x22c   : > { %v579_v31 = vsel %vm332_vm1, %v574_v29, 0 }
 0x232   : > { %v1150_v23 = vpop.eup %1149 }
 0x233   : > { %v391_v25 = vmul.f32 %v1150_v23, %v1148_v18 }
 0x235   : > { %392 = vst.msk [vmem:[%s1389_s12] sm:$0xff] %vm332_vm1, %v391_v25  ;;  %v393_v27 = vpack.c.bf16 %v391_v25, %v391_v25 }
 0x237   : > { %1041 = vmatmul.mubr.msk.bf16.vlgmr.msra.gmra.mrb[0].mxu1 %vm332_vm1, %v393_v27 }
 0x238   : > { %1045 = vmatpush3.bf16.xpose.msra.mxu1 %v456_v26  ;;  %1046 = vmatprep.mubr.msk.bf16.mxu1 %vm1244_vm0, %v1243_v0 }
 0x239   : > { %1056 = vmatprep.subr.bf16.mxu1 %v1243_v0 }
 0x23f   : > { %1047 = vmatmul.mubr.msk.bf16.vlgmr.msra.gmra.mrb[4].mxu1 %vm332_vm1, %v446_v28 }
 0x240   : > { %1057 = vmatpush3.bf16.xpose.msra.mxu1 %v579_v31  ;;  %1058 = vmatprep.mubr.msk.bf16.mxu1 %vm1244_vm0, %v1243_v0 }
 0x241   : > { %1068 = vmatprep.subr.bf16.mxu1 %v1243_v0 }
 0x247   : > { %1059 = vmatmul.mubr.msk.bf16.vlgmr.msra.gmra.mrb[8].mxu1 %vm332_vm1, %v572_v30 }
 0x248   : > { %1069 = vmatpush3.bf16.xpose.msra.mxu1 %v699_v33  ;;  %1070 = vmatprep.mubr.msk.bf16.mxu1 %vm1244_vm0, %v1243_v0 }
 0x24f   : > { %1071 = vmatmul.mubr.msk.bf16.vlgmr.msra.gmra.mrb[12].mxu1 %vm332_vm1, %v692_v34 }
 0x30a   : > { %v435_v35 = vpop.f32.mrb[0].mxu1 }
 0x30b   : > { %441 = vst.msk [vmem:[#allocation2] sm:$0xff] %vm332_vm1, %v435_v35  ;;  %v1042_v36 = vpop.f32.mrb[1].mxu1 }
 0x30c   : > { %v438_v37 = vpop.f32.mrb[2].mxu1 }
 0x30d   : > { %v1043_v38 = vpop.f32.mrb[3].mxu1 }
 0x312   : > { %v492_v39 = vpop.f32.mrb[4].mxu1 }
 0x313   : > { %v498_v40 = vmul.f32 0.35355338, %v492_v39  ;;  %v1048_v41 = vpop.f32.mrb[5].mxu1 }
 0x314   : > { %v495_v42 = vpop.f32.mrb[6].mxu1 }
 0x315   : > { %v1049_v43 = vpop.f32.mrb[7].mxu1  ;;  %v499_v44 = vadd.f32 %v498_v40, %v1365_v5 }
 0x317   : > { %v500_v45 = vsel %vm332_vm1, %v499_v44, -inf }
 0x318   : > { %501 = vmax.xlane.f32.xlu1 %v500_v45 }
 0x31a   : > { %v615_v46 = vpop.f32.mrb[8].mxu1 }
 0x31b   : > { %v621_v47 = vmul.f32 0.35355338, %v615_v46  ;;  %v1060_v48 = vpop.f32.mrb[9].mxu1 }
 0x31c   : > { %v618_v49 = vpop.f32.mrb[10].mxu1 }
 0x31d   : > { %v622_v50 = vadd.f32 %v621_v47, %v1365_v5  ;;  %v1061_v51 = vpop.f32.mrb[11].mxu1 }
 0x31f   : > { %v623_v52 = vsel %vm332_vm1, %v622_v50, -inf }
 0x320   : > { %624 = vmax.xlane.f32.xlu0 %v623_v52 }
 0x322   : > { %v735_v53 = vpop.f32.mrb[12].mxu1 }
 0x323   : > { %v741_v54 = vmul.f32 0.35355338, %v735_v53  ;;  %v1072_v55 = vpop.f32.mrb[13].mxu1 }
 0x324   : > { %v738_v56 = vpop.f32.mrb[14].mxu1 }
 0x325   : > { %v742_v57 = vadd.f32 %v741_v54, %v1365_v5  ;;  %v1073_v58 = vpop.f32.mrb[15].mxu1  ;;  %v1002_v5 = vcombine.low %v1379_v20, %v1379_v20 }
 0x327   : > { %v743_v59 = vsel %vm332_vm1, %v742_v57, -inf }
 0x328   : > { %744 = vmax.xlane.f32.xlu1 %v743_v59 }
 0x3a5   : > { %v502_v60 = vpop.xlane.xlu1 %501 }
 0x3a6   : > { %v503_v61 = vsub.f32 %v499_v44, %v502_v60 }
 0x3a8   : > { %v504_v62 = vmul.f32 1.442695, %v503_v61 }
 0x3aa   : > { %1151 = vpow2.f32 %v504_v62 }
 0x3ad   : > { %v625_v63 = vpop.xlane.xlu0 %624 }
 0x3ae   : > { %v626_v1 = vsub.f32 %v622_v50, %v625_v63 }
 0x3b0   : > { %v627_v2 = vmul.f32 1.442695, %v626_v1 }
 0x3b2   : > { %1153 = vpow2.f32 %v627_v2 }
 0x3b4   : > { %v1152_v3 = vpop.eup %1151 }
 0x3b5   : > { %v506_v4 = vsel %vm332_vm1, %v1152_v3, 0.0  ;;  %v745_v8 = vpop.xlane.xlu1 %744 }
 0x3b6   : > { %507 = vadd.xlane.f32.xlu1 %v506_v4  ;;  %v746_v9 = vsub.f32 %v742_v57, %v745_v8 }
 0x3b8   : > { %v747_v10 = vmul.f32 1.442695, %v746_v9 }
 0x3ba   : > { %1155 = vpow2.f32 %v747_v10 }
 0x3bc   : > { %v1154_v6 = vpop.eup %1153 }
 0x3bd   : > { %v629_v7 = vsel %vm332_vm1, %v1154_v6, 0.0 }
 0x3be   : > { %630 = vadd.xlane.f32.xlu0 %v629_v7 }
 0x3c4   : > { %v1156_v11 = vpop.eup %1155 }
 0x3c5   : > { %v749_v12 = vsel %vm332_vm1, %v1156_v11, 0.0 }
 0x3c7   : > { %637 = vrot.lane.b32.xlu1 %v1002_v5, %s1246_s25  ;;  %s1446_s25 = scalar_lea.hbm %s1508_s5, %s1015_s15 }
 0x3d4   : > { %517 = vrot.lane.b32.xlu0 %v1002_v5, %s1245_s24 }
 0x3eb   : > { %750 = vadd.xlane.f32.xlu1 %v749_v12 }
 0x3fc   : > { %757 = vrot.lane.b32.xlu1 %v1002_v5, %s1247_s27  ;;  %s1452_s27 = scalar_lea.sflag [#allocation4], %s294_s10 }
 0x443   : > { %v508_v13 = vpop.xlane.xlu1 %507 }
 0x444   : > { %1157 = vrcp.f32 %v508_v13 }
 0x447   : > { %v638_v19 = vpop.permute.xlu1 %637 }
 0x448   : > { %v643_v21 = vsel %vm397_vm2, %v638_v19, 0 }
 0x44b   : > { %v631_v14 = vpop.xlane.xlu0 %630 }
 0x44c   : > { %1159 = vrcp.f32 %v631_v14 }
 0x44e   : > { %v1158_v15 = vpop.eup %1157 }
 0x44f   : > { %v510_v16 = vmul.f32 %v1158_v15, %v1152_v3  ;;  %v518_v17 = vpop.permute.xlu0 %517 }
 0x450   : > { %v523_v18 = vsel %vm397_vm2, %v518_v17, 0 }
 0x451   : > { %1001 = vst.msk [vmem:[%s1389_s12 + $0x8] sm:$0xff] %vm332_vm1, %v510_v16  ;;  %1051 = vmatpush3.bf16.msra.mxu0 %v523_v18  ;;  %v513_v20 = vpack.c.bf16 %v510_v16, %v510_v16 }
 0x452   : > { %1062 = vmatprep.subr.bf16.mxu0 %v1243_v0 }
 0x454   : > { %1053 = vmatmul.mubr.msk.bf16.vlgmr.msra.gmra.mrb[4].mxu0 %vm332_vm1, %v513_v20 }
 0x455   : > { %1063 = vmatpush3.bf16.msra.mxu0 %v643_v21  ;;  %1064 = vmatprep.mubr.msk.bf16.mxu0 %vm1244_vm0, %v1243_v0 }
 0x456   : > { %v1160_v22 = vpop.eup %1159  ;;  %1074 = vmatprep.subr.bf16.mxu0 %v1243_v0 }
 0x457   : > { %v633_v23 = vmul.f32 %v1160_v22, %v1154_v6 }
 0x459   : > { %1005 = vst.msk [vmem:[%s1389_s12 + $0x10] sm:$0xff] %vm332_vm1, %v633_v23  ;;  %v636_v24 = vpack.c.bf16 %v633_v23, %v633_v23 }
 0x45c   : > { %1065 = vmatmul.mubr.msk.bf16.vlgmr.msra.gmra.mrb[8].mxu0 %vm332_vm1, %v636_v24 }
 0x45d   : > { %1076 = vmatprep.mubr.msk.bf16.mxu0 %vm1244_vm0, %v1243_v0 }
 0x478   : > { %v751_v25 = vpop.xlane.xlu1 %750 }
 0x479   : > { %1161 = vrcp.f32 %v751_v25 }
 0x47c   : > { %v758_v26 = vpop.permute.xlu1 %757 }
 0x47d   : > { %v763_v27 = vsel %vm397_vm2, %v758_v26, 0 }
 0x47e   : > { %1075 = vmatpush3.bf16.msra.mxu0 %v763_v27 }
 0x483   : > { %v1162_v28 = vpop.eup %1161 }
 0x484   : > { %v753_v29 = vmul.f32 %v1162_v28, %v1156_v11 }
 0x486   : > { %1008 = vst.msk [vmem:[%s1389_s12 + $0x18] sm:$0xff] %vm332_vm1, %v753_v29  ;;  %v756_v30 = vpack.c.bf16 %v753_v29, %v753_v29 }
 0x488   : > { %1077 = vmatmul.mubr.msk.bf16.vlgmr.msra.gmra.mrb[12].mxu0 %vm332_vm1, %v756_v30 }
 0x527   : > { %v559_v31 = vpop.f32.mrb[4].mxu0 }
 0x528   : > { %566 = vrot.lane.b32.xlu0 %v559_v31, %s1248_s13  ;;  %v1054_v0 = vpop.f32.mrb[5].mxu0 }
 0x529   : > { %v562_v32 = vpop.f32.mrb[6].mxu0 }
 0x52a   : > { %v1055_v33 = vpop.f32.mrb[7].mxu0 }
 0x52f   : > { %v679_v34 = vpop.f32.mrb[8].mxu0 }
 0x530   : > { %686 = vrot.lane.b32.xlu1 %v679_v34, %s1249_s14  ;;  %v1066_v35 = vpop.f32.mrb[9].mxu0 }
 0x531   : > { %v682_v36 = vpop.f32.mrb[10].mxu0 }
 0x532   : > { %v1067_v37 = vpop.f32.mrb[11].mxu0 }
 0x533   : > { %1176 = shalt.err (!%p1173_p5)
}
 0x534   : > { %s1177_s10 = scalar_lea.hbm %s1446_s25, 512  ;;  %s1181_s14 = scalar_lea.hbm %s1508_s5, 1024 }
 0x535   : > { %p1178_p6 = scmp.ne.s32.totalorder %s1446_s25, %s1177_s10  ;;  %p1182_p10 = scmp.lt.u32.totalorder %s1446_s25, %s1508_s5 }
 0x536   : > { %p1183_p11 = scmp.lt.u32.totalorder %s1181_s14, %s1177_s10  ;;  %p1185_p13 = scmp.lt.u32.totalorder %s1177_s10, %s1446_s25 }
 0x537   : > { %p1179_p7 = pnand %p1178_p6, %p1323_p4 }
 0x538   : > { %p1184_p12 = por %p1183_p11, %p1182_p10 }
 0x539   : > { %p1180_p9 = pneg %p1179_p7 }
 0x53a   : > { %p1186_p0 = por %p1185_p13, %p1184_p12 }
 0x53c   : > { %p1187_p1 = pnand %p1186_p0, %p1180_p9 }
 0x53e   : > { %1190 = shalt.err (!%p1187_p1)
}
 0x53f   : > { %s1251_s24 = smov 128   ;;  %s1252_s29 = smov 24   ;;  %vm569_vm3 = vcmask 130112   ;;  %vm689_vm4 = vcmask 195712   ;;  %vm809_vm5 = vcmask 261312   ;;  %vm813_vm6 = vcmask 257024  }
 0x540   : > { %1080 = dma.vmem_to_hbm [thread:$0]  (%p1323_p4), %s1448_s16, 512, %s1446_s25, %s1452_s27, %s1251_s24, %s1251_s24, %s1248_s13  }
 0x541   : > { %s325_s13 = scalar_lea.vmem %s1507_s4, %s1346_s8 }
 0x55b   : > { %v799_v38 = vpop.f32.mrb[12].mxu0 }
 0x55c   : > { %806 = vrot.lane.b32.xlu0 %v799_v38, %s1252_s29  ;;  %v1078_v39 = vpop.f32.mrb[13].mxu0 }
 0x55d   : > { %v802_v40 = vpop.f32.mrb[14].mxu0 }
 0x55e   : > { %v1079_v41 = vpop.f32.mrb[15].mxu0 }
 0x59a   : > { %v567_v42 = vpop.permute.xlu0 %566 }
 0x59b   : > { %570 = vst.msk [vmem:[#allocation2] sm:$0xff] %vm569_vm3, %v567_v42 }
 0x5a2   : > { %v687_v43 = vpop.permute.xlu1 %686 }
 0x5a3   : > { %690 = vst.msk [vmem:[#allocation2] sm:$0xff] %vm689_vm4, %v687_v43 }
 0x5ce   : > { %v807_v44 = vpop.permute.xlu0 %806 }
 0x5cf   : > { %810 = vst.msk [vmem:[#allocation2] sm:$0xff] %vm809_vm5, %v807_v44 }
 0x5d6   : > { %v811_v45 = vld [vmem:[#allocation2] sm:$0xff] }
 0x5d7   : > { %v812_v46 = vpack.c.bf16 %v811_v45, %v811_v45 }
 0x5d9   : > { %814 = vst.msk [vmem:[%s325_s13] sm:$0xf] %vm813_vm6, %v812_v46 }
 0x5da PF: > { %p1086_p4 = scmp.ge.s32.totalorder %s1241_s23, 2  ;;  %s865_s16 = sand.u32 1, %s1221_s18  }
 0x5db   : > { %s866_s25 = scalar_lea.sflag [#allocation4], %s865_s16 }
 0x5dc   : > { %p1083_p2 = pnand %p1086_p4, %p1330_p8 }
 0x5de   : > { %1216 = dma.done.wait (!%p1083_p2), %s866_s25, 512  }
 0x5df   : > { %1218 = vsyncadd (!%p1083_p2), %s866_s25, 4294966784  ;;  %s19_s23 = sadd.s32 1, %s1241_s23   ;;  %s1511_s18 = smov %s1225_s19 }
 0x5e0   : > { %p16_p3 = scmp.ge.s32.totalorder %s19_s23, 4   ;;  %s1512_s19 = smov %s1229_s20 }
 0x5e1   : > { %s1513_s20 = smov %s1336_s6  ;;  %s1514_s21 = smov %s1237_s22 }
 0x5e2   : > { %s1515_s22 = smov %s1517_s26  ;;  %18 = sbr.rel (!%p16_p3) target bundleno = 4 (0x4), region = 95 }
 0x5e9   :  { %871 = vsyncpa [#allocation4], 1 }
 0x5ea   :  { %873 = vsyncpa [#allocation4 + $0x1], 1 }

// kernel: decoder_forward.21
= control target key start
LH: loop header
LB: loop body
LE: loop exit
PB: predicated region body
PF: predicated region fallthrough
CT: control target
= control target key end

     0   :  { %s564_s15 = smov 0   ;;  %s566_s16 = smov 0   ;;  %s611_s0 = inlined_call_operand.vmem [shape: f32[16,32], index: 0, kind: input, shape index: {}]   ;;  %s612_s1 = inlined_call_operand.vmem [shape: bf16[32,64], index: 1, kind: input, shape index: {}]   ;;  %s613_s2 = inlined_call_operand.vmem [shape: f32[1,64], index: 2, kind: input, shape index: {}]   ;;  %s614_s3 = inlined_call_operand.vmem [shape: bf16[16,32], index: 3, kind: output, shape index: {0}]   ;;  %s615_s4 = inlined_call_operand.vmem [shape: bf16[16,32], index: 4, kind: output, shape index: {1}]  }
   0x1   :  { %s568_s17 = smov 0  }
   0x2 LB: > { %s27_s18 = sadd.s32 1, %s530_s16  ;;  %p460_p0 = scmp.ge.s32.totalorder %s534_s17, 1  ;;  %s534_s17 = sphi %s568_s17, %s15_s17   ;;  %s530_s16 = sphi %s566_s16, %s617_s16   ;;  %s526_s15 = sphi %s564_s15, %s616_s15  }
   0x3   : > { %p29_p1 = scmp.ge.s32.totalorder %s27_s18, 2  ;;  %p192_p2 = scmp.lt.s32.totalorder %s534_s17, 3 }
   0x5   : > { %s619_s18 = smov (%p29_p1, %s27_s18), 0  ;;  %p193_p3 = pnand %p460_p0, %p192_p2 }
   0x6   : > { %vm254_vm0 = vcmask (!%p193_p3), 523264   ;;  %v536_v0 = vmov (!%p193_p3), 0.0   ;;  %v510_v1 = vld [vmem:[%s612_s1] sm:$0xff] (!%p193_p3)   ;;  %vm537_vm1 = vmmov (!%p193_p3), 0   ;;  %p228_p4 = scmp.lt.s32.totalorder (!%p193_p3), %s526_s15, 1  ;;  %v511_v2 = vld [vmem:[%s612_s1 + $0x8] sm:$0xff] (!%p193_p3)  }
   0x7   : > { %196 = sbr.rel (%p193_p3) target bundleno = 362 (0x16a), region = 32  ;;  %255 = vst.msk [vmem:[#allocation2] sm:$0xff] (!%p193_p3), %vm254_vm0, %v536_v0  ;;  %475 = vmatprep.subr.bf16.mxu0 (!%p193_p3), %v536_v0  ;;  %479 = vmatprep.mubr.msk.bf16.mxu0 (!%p193_p3), %vm537_vm1, %v536_v0  ;;  %vm275_vm2 = vcmask (!%p193_p3), 261120   ;;  %v467_v11 = vld [vmem:[%s613_s2] ss:$0 sm:$0xff] (!%p193_p3)  ;;  %vm335_vm3 = vcmask (!%p193_p3), 257024  }
   0x8   : > { %476 = vmatpush3.bf16.msra.mxu0 (!%p193_p3), %v510_v1  ;;  %s538_s7 = smov (!%p193_p3), 96  }
   0x9   : > { %477 = vmatprep.subr.bf16.mxu0 (!%p193_p3), %v536_v0 }
   0xc   : > { %478 = vmatpush3.bf16.msra.mxu0 (!%p193_p3), %v511_v2 }
   0xe   : > { %s621_s15 = smov (!%p228_p4, %s526_s15), 1  ;;  %v256_v5 = vld [vmem:[#allocation2] sm:$0xff] }
   0xf   : > { %s461_s23 = sshll.u32 %s621_s15, 3  ;;  %s462_s29 = sshll.u32 %s621_s15, 2 }
  0x10   : > { %s234_s26 = scalar_lea.vmem %s611_s0, %s461_s23  ;;  %s244_s6 = scalar_lea.vmem %s614_s3, %s462_s29 }
  0x11   : > { %v257_v3 = vld [vmem:[%s234_s26] sm:$0xff]  ;;  %s248_s10 = scalar_lea.vmem %s615_s4, %s462_s29 }
  0x12   : > { %v258_v4 = vpack.c.bf16 %v257_v3, %v257_v3 }
  0x14   : > { %480 = vmatmul.mubr.msk.bf16.vlgmr.msra.gmra.mrb[0].mxu0 %vm275_vm2, %v258_v4 }
  0xe7   : > { %v313_v6 = vpop.f32.mrb[0].mxu0 }
  0xe8   : > { %v319_v7 = vadd.f32 %v313_v6, %v256_v5  ;;  %v481_v8 = vpop.f32.mrb[1].mxu0 }
  0xe9   : > { %v316_v9 = vpop.f32.mrb[2].mxu0 }
  0xea   : > { %321 = vst.msk [vmem:[#allocation2] sm:$0xff] %vm254_vm0, %v319_v7  ;;  %v482_v10 = vpop.f32.mrb[3].mxu0 }
  0xf1   : > { %v325_v12 = vld [vmem:[#allocation2] sm:$0xff] }
  0xf2   : > { %v333_v13 = vadd.f32 %v467_v11, %v325_v12 }
  0xf4   : > { %v334_v14 = vpack.c.bf16 %v333_v13, %v333_v13 }
  0xf6   : > { %340 = vrot.lane.b32.xlu0 %v334_v14, %s538_s7  ;;  %336 = vst.msk [vmem:[%s244_s6] sm:$0xf] %vm335_vm3, %v334_v14 }
 0x168   : > { %v341_v15 = vpop.permute.xlu0 %340 }
 0x169   : > { %343 = vst.msk [vmem:[%s248_s10] sm:$0xf] %vm335_vm3, %v341_v15 }
 0x16a PF: > { %s15_s17 = sadd.s32 1, %s534_s17   ;;  %s616_s15 = smov %s530_s16 }
 0x16b   : > { %p12_p5 = scmp.ge.s32.totalorder %s15_s17, 4   ;;  %s617_s16 = smov %s619_s18 }
 0x16d   :  { %14 = sbr.rel (!%p12_p5) target bundleno = 2 (0x2), region = 85 }

// kernel: decoder_forward.33
= control target key start
LH: loop header
LB: loop body
LE: loop exit
PB: predicated region body
PF: predicated region fallthrough
CT: control target
= control target key end

     0   :  { %8 = vsyncpa [#allocation4], 0  ;;  %s764_s0 = inlined_call_operand.vmem [shape: f32[16,32], index: 0, kind: input, shape index: {}]   ;;  %s765_s1 = inlined_call_operand.vmem [shape: bf16[32,50], index: 1, kind: input, shape index: {}]   ;;  %s766_s2 = inlined_call_operand.vmem [shape: f32[1,50], index: 2, kind: input, shape index: {}]   ;;  %s767_s3 = inlined_call_operand.hbm [shape: f32[16,50], index: 3, kind: output, shape index: {}]  }
   0x1   :  { %10 = vsyncpa [#allocation4 + $0x1], 0  ;;  %s640_s12 = smov 0   ;;  %s642_s13 = smov 0  }
   0x2   :  { %s644_s14 = smov 0   ;;  %s646_s15 = smov 0  }
   0x3   :  { %s648_s16 = smov 0   ;;  %s650_s17 = smov 0  }
   0x4 LB: > { %s450_s18 = sadd.s32 4294967295, %s615_s17   ;;  %s451_s19 = sadd.s32 4294967294, %s615_s17   ;;  %s615_s17 = sphi %s650_s17, %s16_s17   ;;  %s611_s16 = sphi %s648_s16, %s774_s16   ;;  %s607_s15 = sphi %s646_s15, %s773_s15   ;;  %s603_s14 = sphi %s644_s14, %s772_s14   ;;  %s599_s13 = sphi %s642_s13, %s771_s13   ;;  %s595_s12 = sphi %s640_s12, %s770_s12  }
   0x5   : > { %s35_s20 = sadd.s32 1, %s611_s16  ;;  %s126_s21 = sadd.s32 1, %s603_s14 }
   0x6   : > { %p37_p0 = scmp.ge.s32.totalorder %s35_s20, 2  ;;  %p136_p1 = scmp.ne.s32.totalorder %s603_s14, %s599_s13 }
   0x7   : > { %p137_p2 = scmp.eq.s32.totalorder %s450_s18, 1  ;;  %p142_p3 = scmp.ne.s32.totalorder %s599_s13, %s595_s12 }
   0x8   : > { %s776_s20 = smov (%p37_p0, %s35_s20), 0  ;;  %p143_p5 = scmp.eq.s32.totalorder %s451_s19, 1 }
   0x9   : > { %p680_p4 = por %p137_p2, %p136_p1  ;;  %s121_s23 = ssub.s32 %s611_s16, %s776_s20 }
   0xa   : > { %p456_p6 = scmp.ge.s32.totalorder %s615_s17, 1  ;;  %p124_p7 = scmp.eq.s32.totalorder %s121_s23, 0 }
   0xb   : > { %p687_p8 = por %p143_p5, %p142_p3  ;;  %p189_p9 = scmp.lt.s32.totalorder %s615_s17, 3 }
   0xc   : > { %s693_s25 = scalar_select %p124_p7, %s603_s14, %s126_s21  }
   0xd   : > { %p190_p10 = pnand %p456_p6, %p189_p9 }
   0xe   : > { %v535_v0 = vld [vmem:[%s765_s1] sm:$0xff] (!%p190_p10)   ;;  %v617_v1 = vmov (!%p190_p10), 0.0   ;;  %v536_v2 = vld [vmem:[%s765_s1 + $0x8] sm:$0xff] (!%p190_p10)   ;;  %vm618_vm0 = vmmov (!%p190_p10), 0   ;;  %p226_p11 = scmp.lt.s32.totalorder (!%p190_p10), %s607_s15, 1  ;;  %vm250_vm1 = vcmask (!%p190_p10), 408576  }
   0xf   : > { %193 = sbr.rel (%p190_p10) target bundleno = 267 (0x10b), region = 32  ;;  %470 = vmatprep.subr.bf16.mxu0 (!%p190_p10), %v617_v1  ;;  %474 = vmatprep.mubr.msk.bf16.mxu0 (!%p190_p10), %vm618_vm0, %v617_v1  ;;  %251 = vst.msk [vmem:[#allocation2] sm:$0xff] (!%p190_p10), %vm250_vm1, %v617_v1  ;;  %vm271_vm2 = vcmask (!%p190_p10), 261120   ;;  %s223_s8 = sand.u32 (!%p190_p10), 1, %s599_s13   ;;  %v462_v11 = vld [vmem:[%s766_s2] ss:$0 sm:$0xff] (!%p190_p10) }
  0x10   : > { %471 = vmatpush3.bf16.msra.mxu0 (!%p190_p10), %v535_v0  ;;  %s457_s9 = sshll.u32 (!%p190_p10), %s223_s8, 3  ;;  %s464_s18 = sshll.u32 (!%p190_p10), %s607_s15, 7 }
  0x11   : > { %472 = vmatprep.subr.bf16.mxu0 (!%p190_p10), %v617_v1  ;;  %s225_s19 = scalar_lea.vmem (!%p190_p10), [#allocation3], %s457_s9  ;;  %s716_s27 = scalar_lea.hbm (!%p190_p10), %s767_s3, %s464_s18 }
  0x12   : > { %s346_s21 = sshll.u32 (!%p190_p10), %s225_s19, 4  ;;  %s332_s28 = scalar_lea.sflag (!%p190_p10), [#allocation4], %s223_s8  ;;  %s718_s21 = int_to_ptr.vmem [resolvable:$true] %s346_s21 }
  0x13   : > { %s537_s29 = scalar_lea.vmem (!%p190_p10), %s718_s21, 128 }
  0x14   : > { %473 = vmatpush3.bf16.msra.mxu0 (!%p190_p10), %v536_v2  ;;  %p538_p12 = scmp.ne.s32.totalorder (!%p190_p10), %s718_s21, %s537_s29 }
  0x16   : > { %s227_s30 = scalar_select %p226_p11, %s607_s15, 1  ;;  %v252_v5 = vld [vmem:[#allocation2] sm:$0xff] }
  0x17   : > { %p539_p13 = pnand %p538_p12, %p680_p4  ;;  %s619_s15 = smov [#allocation3]  }
  0x18   : > { %s458_s4 = sshll.u32 %s227_s30, 3  ;;  %s541_s30 = sshll.u32 %s619_s15, 4  ;;  %s542_s30 = int_to_ptr.vmem [resolvable:$false] %s541_s30 }
  0x19   : > { %s232_s7 = scalar_lea.vmem %s764_s0, %s458_s4  ;;  %p540_p0 = pneg %p539_p13 }
  0x1a   : > { %v253_v3 = vld [vmem:[%s232_s7] sm:$0xff]  ;;  %s543_s4 = scalar_lea.vmem %s542_s30, 256  ;;  %p544_p1 = scmp.lt.s32.totalorder %s718_s21, %s542_s30 }
  0x1b   : > { %v254_v4 = vpack.c.bf16 %v253_v3, %v253_v3  ;;  %p545_p2 = scmp.lt.s32.totalorder %s543_s4, %s537_s29 }
  0x1d   : > { %475 = vmatmul.mubr.msk.bf16.vlgmr.msra.gmra.mrb[0].mxu0 %vm271_vm2, %v254_v4  ;;  %p546_p3 = por %p545_p2, %p544_p1 }
  0x1f   : > { %p547_p5 = pnand %p546_p3, %p540_p0 }
  0xf0   : > { %v309_v6 = vpop.f32.mrb[0].mxu0 }
  0xf1   : > { %v315_v7 = vadd.f32 %v309_v6, %v252_v5  ;;  %v476_v8 = vpop.f32.mrb[1].mxu0 }
  0xf2   : > { %v312_v9 = vpop.f32.mrb[2].mxu0 }
  0xf3   : > { %317 = vst.msk [vmem:[#allocation2] sm:$0xff] %vm250_vm1, %v315_v7  ;;  %v477_v10 = vpop.f32.mrb[3].mxu0 }
  0xfa   : > { %v321_v12 = vld [vmem:[#allocation2] sm:$0xff] }
  0xfb   : > { %v329_v13 = vadd.f32 %v462_v11, %v321_v12 }
  0xfd   : > { %330 = vst.msk [vmem:[%s225_s19] sm:$0xff] %vm250_vm1, %v329_v13 }
  0xfe   : > { %550 = shalt.err (!%p547_p5)
}
  0xff   : > { %s551_s5 = scalar_lea.hbm %s716_s27, 128  ;;  %s555_s8 = scalar_lea.hbm %s767_s3, 256 }
 0x100   : > { %p552_p6 = scmp.ne.s32.totalorder %s716_s27, %s551_s5  ;;  %p556_p10 = scmp.lt.u32.totalorder %s716_s27, %s767_s3 }
 0x101   : > { %p557_p11 = scmp.lt.u32.totalorder %s555_s8, %s551_s5  ;;  %p559_p13 = scmp.lt.u32.totalorder %s551_s5, %s716_s27 }
 0x102   : > { %p553_p7 = pnand %p552_p6, %p680_p4 }
 0x103   : > { %p558_p12 = por %p557_p11, %p556_p10 }
 0x104   : > { %p554_p9 = pneg %p553_p7 }
 0x105   : > { %p560_p0 = por %p559_p13, %p558_p12 }
 0x107   : > { %p561_p1 = pnand %p560_p0, %p554_p9 }
 0x109   : > { %564 = shalt.err (!%p561_p1)
}
 0x10a   : > { %478 = dma.vmem_to_hbm [thread:$0]  (%p680_p4), %s718_s21, 128, %s716_s27, %s332_s28  }
 0x10b PF: > { %p484_p2 = scmp.ge.s32.totalorder %s615_s17, 2  ;;  %s358_s11 = sand.u32 1, %s595_s12  }
 0x10c   : > { %s359_s18 = scalar_lea.sflag [#allocation4], %s358_s11 }
 0x10d   : > { %p481_p3 = pnand %p484_p2, %p687_p8 }
 0x10f   : > { %590 = dma.done.wait (!%p481_p3), %s359_s18, 128  }
 0x110   : > { %592 = vsyncadd (!%p481_p3), %s359_s18, 4294967168  ;;  %s16_s17 = sadd.s32 1, %s615_s17   ;;  %s770_s12 = smov %s599_s13 }
 0x111   : > { %p13_p5 = scmp.ge.s32.totalorder %s16_s17, 4   ;;  %s771_s13 = smov %s603_s14 }
 0x112   : > { %s772_s14 = smov %s693_s25  ;;  %s773_s15 = smov %s611_s16 }
 0x113   : > { %s774_s16 = smov %s776_s20  ;;  %15 = sbr.rel (!%p13_p5) target bundleno = 4 (0x4), region = 81 }
 0x11a   :  { %364 = vsyncpa [#allocation4], 1 }
 0x11b   :  { %366 = vsyncpa [#allocation4 + $0x1], 1 }

// kernel: decoder_forward.24
= control target key start
LH: loop header
LB: loop body
LE: loop exit
PB: predicated region body
PF: predicated region fallthrough
CT: control target
= control target key end

     0   :  { %s797_s24 = smov 0   ;;  %s799_s25 = smov 0   ;;  %s873_s0 = inlined_call_operand.vmem [shape: f32[16,32], index: 0, kind: input, shape index: {}]   ;;  %s874_s1 = inlined_call_operand.vmem [shape: bf16[32,64], index: 1, kind: input, shape index: {}]   ;;  %s875_s2 = inlined_call_operand.vmem [shape: f32[1,64], index: 2, kind: input, shape index: {}]   ;;  %s876_s3 = inlined_call_operand.vmem [shape: bf16[64,32], index: 3, kind: input, shape index: {}]   ;;  %s877_s4 = inlined_call_operand.vmem [shape: f32[1,32], index: 4, kind: input, shape index: {}]   ;;  %s878_s5 = inlined_call_operand.vmem [shape: f32[1,32], index: 5, kind: input, shape index: {}]   ;;  %s879_s6 = inlined_call_operand.vmem [shape: f32[1,32], index: 6, kind: input, shape index: {}]   ;;  %s880_s7 = inlined_call_operand.vmem [shape: f32[16,32], index: 7, kind: output, shape index: {}]  }
   0x1   :  { %s801_s26 = smov 0  }
   0x2 LB: > { %s29_s27 = sadd.s32 1, %s749_s25  ;;  %p652_p0 = scmp.ge.s32.totalorder %s753_s26, 1  ;;  %s753_s26 = sphi %s801_s26, %s17_s26   ;;  %s749_s25 = sphi %s799_s25, %s882_s25   ;;  %s745_s24 = sphi %s797_s24, %s881_s24  }
   0x3   : > { %p31_p1 = scmp.ge.s32.totalorder %s29_s27, 2  ;;  %p276_p2 = scmp.lt.s32.totalorder %s753_s26, 3 }
   0x5   : > { %s884_s27 = smov (%p31_p1, %s29_s27), 0  ;;  %p277_p3 = pnand %p652_p0, %p276_p2 }
   0x6   : > { %v723_v0 = vld [vmem:[%s874_s1] sm:$0xff] (!%p277_p3)   ;;  %v755_v1 = vmov (!%p277_p3), 0.0   ;;  %v724_v2 = vld [vmem:[%s874_s1 + $0x8] sm:$0xff] (!%p277_p3)   ;;  %vm756_vm0 = vmmov (!%p277_p3), 0   ;;  %p318_p4 = scmp.lt.s32.totalorder (!%p277_p3), %s745_s24, 1  ;;  %vm344_vm1 = vcmask (!%p277_p3), 261120  }
   0x7   : > { %280 = sbr.rel (%p277_p3) target bundleno = 778 (0x30a), region = 48  ;;  %677 = vmatprep.subr.bf16.mxu0 (!%p277_p3), %v755_v1  ;;  %685 = vmatprep.subr.bf16.mxu1 (!%p277_p3), %v755_v1  ;;  %345 = vst.msk [vmem:[#allocation2] sm:$0xff] (!%p277_p3), %vm344_vm1, %v755_v1  ;;  %v725_v3 = vld [vmem:[%s876_s3] sm:$0xff] (!%p277_p3)   ;;  %v726_v4 = vld [vmem:[%s876_s3 + $0x8] sm:$0xff] (!%p277_p3)   ;;  %v727_v7 = vld [vmem:[%s876_s3 + $0x10] sm:$0xff] (!%p277_p3)   ;;  %vm450_vm2 = vcmask (!%p277_p3), 523264  }
   0x8   : > { %678 = vmatpush3.bf16.msra.mxu0 (!%p277_p3), %v723_v0  ;;  %681 = vmatprep.mubr.msk.bf16.mxu0 (!%p277_p3), %vm756_vm0, %v755_v1  ;;  %v728_v8 = vld [vmem:[%s876_s3 + $0x18] sm:$0xff] (!%p277_p3)   ;;  %v655_v9 = vld [vmem:[%s875_s2] ss:$0 sm:$0xff] (!%p277_p3) }
   0x9   : > { %679 = vmatprep.subr.bf16.mxu0 (!%p277_p3), %v755_v1  ;;  %693 = vmatprep.mubr.msk.bf16.mxu1 (!%p277_p3), %vm756_vm0, %v755_v1  ;;  %v664_v23 = vld [vmem:[%s877_s4] ss:$0 sm:$0xff] (!%p277_p3) }
   0xa   : > { %686 = vmatpush3.bf16.msra.mxu1 (!%p277_p3), %v725_v3  ;;  %v665_v37 = vld [vmem:[%s878_s5] ss:$0 sm:$0xff] (!%p277_p3) }
   0xb   : > { %687 = vmatprep.subr.bf16.mxu1 (!%p277_p3), %v755_v1  ;;  %v666_v39 = vld [vmem:[%s879_s6] ss:$0 sm:$0xff] (!%p277_p3) }
   0xc   : > { %680 = vmatpush3.bf16.msra.mxu0 (!%p277_p3), %v724_v2 }
   0xe   : > { %s886_s24 = smov (!%p318_p4, %s745_s24), 1  ;;  %688 = vmatpush3.bf16.msra.mxu1 %v726_v4  ;;  %v416_v17 = vld [vmem:[#allocation2] sm:$0xff] }
   0xf   : > { %s653_s13 = sshll.u32 %s886_s24, 3  ;;  %689 = vmatprep.subr.bf16.mxu1 %v755_v1 }
  0x10   : > { %s321_s16 = scalar_lea.vmem %s873_s0, %s653_s13  ;;  %s338_s12 = scalar_lea.vmem %s880_s7, %s653_s13 }
  0x11   : > { %v346_v5 = vld [vmem:[%s321_s16] sm:$0xff] }
  0x12   : > { %v347_v6 = vpack.c.bf16 %v346_v5, %v346_v5  ;;  %690 = vmatpush3.bf16.msra.mxu1 %v727_v7 }
  0x13   : > { %691 = vmatprep.subr.bf16.mxu1 %v755_v1 }
  0x14   : > { %682 = vmatmul.mubr.msk.bf16.vlgmr.msra.gmra.mrb[0].mxu0 %vm344_vm1, %v347_v6 }
  0x16   : > { %692 = vmatpush3.bf16.msra.mxu1 %v728_v8 }
  0xe7   : > { %v409_v10 = vpop.f32.mrb[0].mxu0 }
  0xe8   : > { %v410_v11 = vadd.f32 %v655_v9, %v409_v10  ;;  %v683_v12 = vpop.f32.mrb[1].mxu0 }
  0xe9   : > { %v412_v13 = vpop.f32.mrb[2].mxu0 }
  0xea   : > { %v415_v14 = vmax.f32 %v410_v11, 0.0  ;;  %v684_v15 = vpop.f32.mrb[3].mxu0 }
  0xec   : > { %v417_v16 = vpack.c.bf16 %v415_v14, %v415_v14 }
  0xee   : > { %694 = vmatmul.mubr.msk.bf16.vlgmr.msra.gmra.mrb[0].mxu1 %vm450_vm2, %v417_v16 }
 0x1c1   : > { %v488_v18 = vpop.f32.mrb[0].mxu1 }
 0x1c2   : > { %v494_v19 = vadd.f32 %v488_v18, %v416_v17  ;;  %v695_v20 = vpop.f32.mrb[1].mxu1 }
 0x1c3   : > { %v491_v21 = vpop.f32.mrb[2].mxu1 }
 0x1c4   : > { %495 = vst.msk [vmem:[#allocation2] sm:$0xff] %vm344_vm1, %v494_v19  ;;  %v696_v22 = vpop.f32.mrb[3].mxu1 }
 0x1cb   : > { %v499_v24 = vld [vmem:[#allocation2] sm:$0xff] }
 0x1cc   : > { %v507_v25 = vadd.f32 %v664_v23, %v499_v24 }
 0x1ce   : > { %v509_v26 = vadd.f32 %v507_v25, %v346_v5 }
 0x1d0   : > { %v510_v27 = vsel %vm344_vm1, %v509_v26, 0.0 }
 0x1d1   : > { %511 = vadd.xlane.f32.xlu0 %v510_v27 }
 0x25e   : > { %v512_v28 = vpop.xlane.xlu0 %511 }
 0x25f   : > { %v514_v29 = vmul.f32 0.03125, %v512_v28 }
 0x261   : > { %v515_v30 = vsub.f32 %v509_v26, %v514_v29 }
 0x263   : > { %v516_v31 = vmul.f32 %v515_v30, %v515_v30 }
 0x265   : > { %v517_v32 = vsel %vm344_vm1, %v516_v31, 0.0 }
 0x266   : > { %518 = vadd.xlane.f32.xlu0 %v517_v32 }
 0x2f3   : > { %v519_v33 = vpop.xlane.xlu0 %518 }
 0x2f4   : > { %v520_v34 = vmul.f32 0.03125, %v519_v33 }
 0x2f6   : > { %v521_v35 = vadd.f32 1e-05, %v520_v34 }
 0x2f8   : > { %729 = vrsqrt.f32 %v521_v35 }
 0x302   : > { %v730_v36 = vpop.eup %729 }
 0x303   : > { %v523_v38 = vmul.f32 %v730_v36, %v515_v30 }
 0x305   : > { %v531_v40 = vmul.f32 %v665_v37, %v523_v38 }
 0x307   : > { %v539_v41 = vadd.f32 %v666_v39, %v531_v40 }
 0x309   : > { %540 = vst.msk [vmem:[%s338_s12] sm:$0xff] %vm344_vm1, %v539_v41 }
 0x30a PF: > { %s17_s26 = sadd.s32 1, %s753_s26   ;;  %s881_s24 = smov %s749_s25 }
 0x30b   : > { %p14_p5 = scmp.ge.s32.totalorder %s17_s26, 4   ;;  %s882_s25 = smov %s884_s27 }
 0x30d   :  { %16 = sbr.rel (!%p14_p5) target bundleno = 2 (0x2), region = 95 }

</bundles_post_ra>
